<compile_context>
chip_gen: v5e
topology: v5e:2x2
jax: 0.10.0
libtpu: 0.0.40
codegen_flags: <defaults>
</compile_context>

<pallas_src>
import functools
import math

import jax
import jax.numpy as jnp
from jax.experimental import pallas as pl
from jax.experimental.pallas import tpu as pltpu

_VMEM_LIMIT = 64 * 1024 * 1024
_LN_EPS = 1e-5  # torch.nn.LayerNorm default


# ----------------------------------------------------------------------------
# In-kernel helpers (pure jnp on loaded tiles, traced inside the kernel body)
# ----------------------------------------------------------------------------
def _add_layernorm(res, y, g, beta):
    """(res + y) -> LayerNorm, f32 statistics."""
    y = res + y
    mu = jnp.mean(y, axis=-1, keepdims=True)
    c = y - mu
    var = jnp.mean(c * c, axis=-1, keepdims=True)
    return c * jax.lax.rsqrt(var + _LN_EPS) * g + beta


def _mha_add_ln(x_q, x_kv, mask, w_qkv, b_qkv, wo, bo, g, beta,
                num_heads, head_dim, self_attn):
    """MultiheadAttention + residual-add + LayerNorm for one batch element.

    x_q: (Sq, D) f32 (also the residual).  x_kv: (Sk, D) f32.
    w_qkv: (D, 3D) bf16 with softmax scale pre-folded into the Q columns.
    """
    D = num_heads * head_dim
    xq = x_q.astype(jnp.bfloat16)

    if self_attn:
        qkv = jnp.dot(xq, w_qkv, preferred_element_type=jnp.float32) + b_qkv
        q, k, v = qkv[:, :D], qkv[:, D:2 * D], qkv[:, 2 * D:]
    else:
        xkv = x_kv.astype(jnp.bfloat16)
        q = jnp.dot(xq, w_qkv[:, :D],
                    preferred_element_type=jnp.float32) + b_qkv[:, :D]
        kv = jnp.dot(xkv, w_qkv[:, D:],
                     preferred_element_type=jnp.float32) + b_qkv[:, D:]
        k, v = kv[:, :D], kv[:, D:]

    Sq, Sk = q.shape[0], k.shape[0]

    def to_heads(t, s_len):
        # (S, D) -> (H, S, Dh) using only major-dim reshape + minor-2D swap.
        th = t.T.reshape(num_heads, head_dim, s_len)      # (H, Dh, S)
        return jnp.swapaxes(th, 1, 2)                     # (H, S, Dh)

    qh = to_heads(q, Sq).astype(jnp.bfloat16)
    kh = to_heads(k, Sk).astype(jnp.bfloat16)
    vh = to_heads(v, Sk).astype(jnp.bfloat16)

    # Batched-head attention (scale already folded into the q projection).
    s = jnp.einsum('hqd,hkd->hqk', qh, kh,
                   preferred_element_type=jnp.float32)    # (H, Sq, Sk) f32
    if mask is not None:
        s = s + mask[None, :, :]
    s = s - jnp.max(s, axis=-1, keepdims=True)
    p = jnp.exp(s)
    p = p * pl.reciprocal(jnp.sum(p, axis=-1, keepdims=True), approx=True)

    ctx = jnp.einsum('hqk,hkd->hqd', p.astype(jnp.bfloat16), vh,
                     preferred_element_type=jnp.float32)   # (H, Sq, Dh)
    ctx = jnp.swapaxes(ctx, 1, 2).reshape(D, Sq).T         # (Sq, D)

    attn_out = (jnp.dot(ctx.astype(jnp.bfloat16), wo,
                        preferred_element_type=jnp.float32) + bo)
    return _add_layernorm(x_q, attn_out, g, beta)


# ----------------------------------------------------------------------------
# Fused decoder kernel: one grid step = one (batch, layer) pair.
# ----------------------------------------------------------------------------
def _decoder_kernel(*refs, num_heads, head_dim, num_layers,
                    use_tgt_mask, use_mem_mask):
    idx = 0
    x_in_ref = refs[idx]; idx += 1          # (1, St, D) f32
    mem_ref = refs[idx]; idx += 1           # (1, Sm, D) f32
    tmask = None
    if use_tgt_mask:
        tmask = refs[idx][...]; idx += 1    # (St, St) f32 additive
    mmask = None
    if use_mem_mask:
        mmask = refs[idx][...]; idx += 1    # (St, Sm) f32 additive
    (sa_wqkv_ref, sa_bqkv_ref, sa_wo_ref, sa_bo_ref, ln1_g_ref, ln1_b_ref,
     ca_wqkv_ref, ca_bqkv_ref, ca_wo_ref, ca_bo_ref, ln2_g_ref, ln2_b_ref,
     w1_ref, b1_ref, w2_ref, b2_ref, ln3_g_ref, ln3_b_ref,
     fn_g_ref, fn_b_ref, o_ref, x_scr) = refs[idx:]

    layer = pl.program_id(1)

    # First layer for this batch element: load the residual stream into VMEM.
    @pl.when(layer == 0)
    def _():
        x_scr[...] = x_in_ref[0]

    x = x_scr[...]                                    # (St, D) f32

    # ---- self-attention + residual + LayerNorm1 ----
    x = _mha_add_ln(x, x, tmask,
                    sa_wqkv_ref[0], sa_bqkv_ref[0], sa_wo_ref[0], sa_bo_ref[0],
                    ln1_g_ref[0], ln1_b_ref[0],
                    num_heads, head_dim, self_attn=True)

    # ---- cross-attention + residual + LayerNorm2 ----
    x = _mha_add_ln(x, mem_ref[0], mmask,
                    ca_wqkv_ref[0], ca_bqkv_ref[0], ca_wo_ref[0], ca_bo_ref[0],
                    ln2_g_ref[0], ln2_b_ref[0],
                    num_heads, head_dim, self_attn=False)

    # ---- FFN (Linear -> ReLU -> Linear) + residual + LayerNorm3 ----
    h = jnp.dot(x.astype(jnp.bfloat16), w1_ref[0],
                preferred_element_type=jnp.float32) + b1_ref[0]
    h = jnp.maximum(h, 0.0)
    y = jnp.dot(h.astype(jnp.bfloat16), w2_ref[0],
                preferred_element_type=jnp.float32) + b2_ref[0]
    x = _add_layernorm(x, y, ln3_g_ref[0], ln3_b_ref[0])

    x_scr[...] = x                                    # carry to next layer

    # Final decoder norm + single output write, only on the last layer.
    @pl.when(layer == num_layers - 1)
    def _():
        mu = jnp.mean(x, axis=-1, keepdims=True)
        c = x - mu
        var = jnp.mean(c * c, axis=-1, keepdims=True)
        o_ref[0] = (c * jax.lax.rsqrt(var + _LN_EPS) * fn_g_ref[...]
                    + fn_b_ref[...])


# ----------------------------------------------------------------------------
# Parameter initialization (shapes match nn.TransformerDecoderLayer, stacked
# along a leading layer axis so the kernel can stream them per grid step).
# ----------------------------------------------------------------------------
def _uniform(key, shape, fan_in):
    bound = 1.0 / math.sqrt(fan_in)
    return jax.random.uniform(key, shape, jnp.float32, -bound, bound)


def _init_attn(key, d_model, num_heads):
    k1, k2, k3 = jax.random.split(key, 3)
    in_proj_w = _uniform(k1, (3 * d_model, d_model), d_model)   # torch layout
    in_proj_b = _uniform(k2, (3 * d_model,), d_model)
    out_w = _uniform(k3, (d_model, d_model), d_model)
    out_b = jnp.zeros((d_model,), jnp.float32)

    # Fold the 1/sqrt(head_dim) softmax scale into the Q projection.
    head_dim = d_model // num_heads
    scale = 1.0 / math.sqrt(head_dim)
    scale_vec = jnp.concatenate([jnp.full((d_model,), scale, jnp.float32),
                                 jnp.ones((2 * d_model,), jnp.float32)])
    in_proj_w = in_proj_w * scale_vec[:, None]
    in_proj_b = in_proj_b * scale_vec

    return (in_proj_w.T.astype(jnp.bfloat16),   # (D, 3D): y = x @ W^T
            in_proj_b.reshape(1, -1),           # (1, 3D) f32
            out_w.T.astype(jnp.bfloat16),       # (D, D)
            out_b.reshape(1, -1))               # (1, D) f32


_WEIGHT_ORDER = ("sa_wqkv", "sa_bqkv", "sa_wo", "sa_bo", "ln1_g", "ln1_b",
                 "ca_wqkv", "ca_bqkv", "ca_wo", "ca_bo", "ln2_g", "ln2_b",
                 "w1", "b1", "w2", "b2", "ln3_g", "ln3_b")


def init_decoder_params(key, num_layers, d_model, num_heads, dim_feedforward):
    per_layer = []
    for _ in range(num_layers):
        key, ksa, kca, kw1, kb1, kw2, kb2 = jax.random.split(key, 7)
        sa = _init_attn(ksa, d_model, num_heads)
        ca = _init_attn(kca, d_model, num_heads)
        w1 = _uniform(kw1, (dim_feedforward, d_model),
                      d_model).T.astype(jnp.bfloat16)              # (D, Dff)
        b1 = _uniform(kb1, (dim_feedforward,), d_model).reshape(1, -1)
        w2 = _uniform(kw2, (d_model, dim_feedforward),
                      dim_feedforward).T.astype(jnp.bfloat16)      # (Dff, D)
        b2 = _uniform(kb2, (d_model,), dim_feedforward).reshape(1, -1)
        ones = jnp.ones((1, d_model), jnp.float32)
        zeros = jnp.zeros((1, d_model), jnp.float32)
        per_layer.append(dict(
            sa_wqkv=sa[0], sa_bqkv=sa[1], sa_wo=sa[2], sa_bo=sa[3],
            ln1_g=ones, ln1_b=zeros,
            ca_wqkv=ca[0], ca_bqkv=ca[1], ca_wo=ca[2], ca_bo=ca[3],
            ln2_g=ones, ln2_b=zeros,
            w1=w1, b1=b1, w2=w2, b2=b2,
            ln3_g=ones, ln3_b=zeros,
        ))
    params = {k: jnp.stack([lp[k] for lp in per_layer], axis=0)
              for k in _WEIGHT_ORDER}
    params["norm_g"] = jnp.ones((1, d_model), jnp.float32)
    params["norm_b"] = jnp.zeros((1, d_model), jnp.float32)
    return params


# ----------------------------------------------------------------------------
# TransformerDecoder forward (post-norm layers, ReLU FFN, eval mode)
# ----------------------------------------------------------------------------
def transformer_decoder_forward(tgt, memory, params, num_heads,
                                tgt_mask=None, memory_mask=None):
    """tgt: (St, B, D), memory: (Sm, B, D) — PyTorch (seq, batch, d_model)."""
    St, B, D = tgt.shape
    Sm = memory.shape[0]
    L = params["sa_wqkv"].shape[0]
    head_dim = D // num_heads

    x = jnp.transpose(tgt, (1, 0, 2)).astype(jnp.float32)        # (B, St, D)
    mem = jnp.transpose(memory, (1, 0, 2)).astype(jnp.float32)   # (B, Sm, D)

    use_tmask = tgt_mask is not None
    use_mmask = memory_mask is not None

    kernel = functools.partial(
        _decoder_kernel, num_heads=num_heads, head_dim=head_dim,
        num_layers=L, use_tgt_mask=use_tmask, use_mem_mask=use_mmask)

    bmap = lambda b, l: (b, 0, 0)     # per-batch block, constant over layers
    lmap = lambda b, l: (l, 0, 0)     # per-layer weight block
    full2 = lambda b, l: (0, 0)

    inputs = [x, mem]
    in_specs = [pl.BlockSpec((1, St, D), bmap),
                pl.BlockSpec((1, Sm, D), bmap)]
    if use_tmask:
        inputs.append(tgt_mask.astype(jnp.float32))
        in_specs.append(pl.BlockSpec((St, St), full2))
    if use_mmask:
        inputs.append(memory_mask.astype(jnp.float32))
        in_specs.append(pl.BlockSpec((St, Sm), full2))

    for name in _WEIGHT_ORDER:
        arr = params[name]
        inputs.append(arr)
        in_specs.append(pl.BlockSpec((1,) + arr.shape[1:], lmap))
    inputs += [params["norm_g"], params["norm_b"]]
    in_specs += [pl.BlockSpec((1, D), full2), pl.BlockSpec((1, D), full2)]

    out = pl.pallas_call(
        kernel,
        out_shape=jax.ShapeDtypeStruct((B, St, D), jnp.float32),
        grid=(B, L),
        in_specs=in_specs,
        out_specs=pl.BlockSpec((1, St, D), bmap),
        scratch_shapes=[pltpu.VMEM((St, D), jnp.float32)],   # residual carry
        compiler_params=pltpu.CompilerParams(
            dimension_semantics=("parallel", "arbitrary"),
            vmem_limit_bytes=_VMEM_LIMIT),
    )(*inputs)

    return jnp.transpose(out, (1, 0, 2))                         # (St, B, D)


# ----------------------------------------------------------------------------
# Pure-JAX reference (same params / same folded scale) for a sanity check
# ----------------------------------------------------------------------------
def _reference_forward(tgt, memory, params, num_heads,
                       tgt_mask=None, memory_mask=None):
    St, B, D = tgt.shape
    H = num_heads
    Dh = D // H
    L = params["sa_wqkv"].shape[0]
    x = jnp.transpose(tgt, (1, 0, 2)).astype(jnp.float32)
    mem = jnp.transpose(memory, (1, 0, 2)).astype(jnp.float32)

    def ln(y, g, b):
        mu = jnp.mean(y, -1, keepdims=True)
        var = jnp.mean((y - mu) ** 2, -1, keepdims=True)
        return (y - mu) / jnp.sqrt(var + _LN_EPS) * g + b

    def mha(xq, xkv, mask, wqkv, bqkv, wo, bo):
        wqkv = wqkv.astype(jnp.float32)
        q = xq @ wqkv[:, :D] + bqkv[:, :D]
        k = xkv @ wqkv[:, D:2 * D] + bqkv[:, D:2 * D]
        v = xkv @ wqkv[:, 2 * D:] + bqkv[:, 2 * D:]
        heads = lambda t: t.reshape(t.shape[0], t.shape[1], H, Dh).transpose(0, 2, 1, 3)
        s = jnp.einsum('bhqd,bhkd->bhqk', heads(q), heads(k))
        if mask is not None:
            s = s + mask[None, None]
        p = jax.nn.softmax(s, axis=-1)
        ctx = jnp.einsum('bhqk,bhkd->bhqd', p, heads(v))
        ctx = ctx.transpose(0, 2, 1, 3).reshape(xq.shape[0], xq.shape[1], D)
        return ctx @ wo.astype(jnp.float32) + bo

    for l in range(L):
        sa = mha(x, x, tgt_mask, params["sa_wqkv"][l], params["sa_bqkv"][l],
                 params["sa_wo"][l], params["sa_bo"][l])
        x = ln(x + sa, params["ln1_g"][l], params["ln1_b"][l])
        ca = mha(x, mem, memory_mask, params["ca_wqkv"][l], params["ca_bqkv"][l],
                 params["ca_wo"][l], params["ca_bo"][l])
        x = ln(x + ca, params["ln2_g"][l], params["ln2_b"][l])
        h = jnp.maximum(x @ params["w1"][l].astype(jnp.float32) + params["b1"][l], 0.0)
        y = h @ params["w2"][l].astype(jnp.float32) + params["b2"][l]
        x = ln(x + y, params["ln3_g"][l], params["ln3_b"][l])
    x = ln(x, params["norm_g"], params["norm_b"])
    return jnp.transpose(x, (1, 0, 2))


# ----------------------------------------------------------------------------
# Main
# ----------------------------------------------------------------------------
if __name__ == "__main__":
    NUM_LAYERS = 2
    D_MODEL = 32
    N_HEAD = 4
    DIM_FF = 64
    SEQ_TGT = 8
    SEQ_MEM = 8
    BATCH = 2

    key = jax.random.PRNGKey(0)
    kp, kt, km = jax.random.split(key, 3)

    params = init_decoder_params(kp, NUM_LAYERS, D_MODEL, N_HEAD, DIM_FF)
    tgt = jax.random.normal(kt, (SEQ_TGT, BATCH, D_MODEL), jnp.float32)
    memory = jax.random.normal(km, (SEQ_MEM, BATCH, D_MODEL), jnp.float32)

    # Causal additive tgt_mask (like torch's generate_square_subsequent_mask);
    # memory_mask=None exercises the mask-free fast path.
    causal_mask = jnp.where(
        jnp.arange(SEQ_TGT)[:, None] >= jnp.arange(SEQ_TGT)[None, :],
        0.0, -jnp.inf).astype(jnp.float32)

    fwd = jax.jit(functools.partial(transformer_decoder_forward, num_heads=N_HEAD))
    out = fwd(tgt, memory, params, tgt_mask=causal_mask)
    out = jax.block_until_ready(out)

    assert out.shape == (SEQ_TGT, BATCH, D_MODEL)
    assert bool(jnp.all(jnp.isfinite(out)))

    ref = _reference_forward(tgt, memory, params, N_HEAD, tgt_mask=causal_mask)
    assert bool(jnp.allclose(out, ref, atol=5e-2, rtol=5e-2))

    print("KERNEL_OK")
</pallas_src>

<mosaic_0001>
module attributes {stable_mosaic.version = 11 : i64} {
  func.func @_decoder_kernel(%arg0: i32, %arg1: i32, %arg2: memref<1x8x32xf32, #tpu.memory_space<vmem>>, %arg3: memref<1x8x32xf32, #tpu.memory_space<vmem>>, %arg4: memref<8x8xf32, #tpu.memory_space<vmem>>, %arg5: memref<1x32x96xbf16, #tpu.memory_space<vmem>>, %arg6: memref<1x1x96xf32, #tpu.memory_space<vmem>>, %arg7: memref<1x32x32xbf16, #tpu.memory_space<vmem>>, %arg8: memref<1x1x32xf32, #tpu.memory_space<vmem>>, %arg9: memref<1x1x32xf32, #tpu.memory_space<vmem>>, %arg10: memref<1x1x32xf32, #tpu.memory_space<vmem>>, %arg11: memref<1x32x96xbf16, #tpu.memory_space<vmem>>, %arg12: memref<1x1x96xf32, #tpu.memory_space<vmem>>, %arg13: memref<1x32x32xbf16, #tpu.memory_space<vmem>>, %arg14: memref<1x1x32xf32, #tpu.memory_space<vmem>>, %arg15: memref<1x1x32xf32, #tpu.memory_space<vmem>>, %arg16: memref<1x1x32xf32, #tpu.memory_space<vmem>>, %arg17: memref<1x32x64xbf16, #tpu.memory_space<vmem>>, %arg18: memref<1x1x64xf32, #tpu.memory_space<vmem>>, %arg19: memref<1x64x32xbf16, #tpu.memory_space<vmem>>, %arg20: memref<1x1x32xf32, #tpu.memory_space<vmem>>, %arg21: memref<1x1x32xf32, #tpu.memory_space<vmem>>, %arg22: memref<1x1x32xf32, #tpu.memory_space<vmem>>, %arg23: memref<1x32xf32, #tpu.memory_space<vmem>>, %arg24: memref<1x32xf32, #tpu.memory_space<vmem>>, %arg25: memref<1x8x32xf32, #tpu.memory_space<vmem>>, %arg26: memref<8x32xf32, #tpu.memory_space<vmem>>) attributes {dimension_semantics = [#tpu.dimension_semantics<parallel>, #tpu.dimension_semantics<arbitrary>], iteration_bounds = array<i64: 2, 2>, scalar_prefetch = 0 : i64, scratch_operands = 1 : i64, tpu.core_type = #tpu.core_type<tc>, window_params = [{transform_indices = @transform_0, window_bounds = array<i64: 1, 8, 32>}, {transform_indices = @transform_1, window_bounds = array<i64: 1, 8, 32>}, {pipeline_mode = #tpu.pipeline_mode<synchronous>, transform_indices = @transform_2, window_bounds = array<i64: 8, 8>}, {transform_indices = @transform_3, window_bounds = array<i64: 1, 32, 96>}, {transform_indices = @transform_4, window_bounds = array<i64: 1, 1, 96>}, {transform_indices = @transform_5, window_bounds = array<i64: 1, 32, 32>}, {transform_indices = @transform_6, window_bounds = array<i64: 1, 1, 32>}, {transform_indices = @transform_7, window_bounds = array<i64: 1, 1, 32>}, {transform_indices = @transform_8, window_bounds = array<i64: 1, 1, 32>}, {transform_indices = @transform_9, window_bounds = array<i64: 1, 32, 96>}, {transform_indices = @transform_10, window_bounds = array<i64: 1, 1, 96>}, {transform_indices = @transform_11, window_bounds = array<i64: 1, 32, 32>}, {transform_indices = @transform_12, window_bounds = array<i64: 1, 1, 32>}, {transform_indices = @transform_13, window_bounds = array<i64: 1, 1, 32>}, {transform_indices = @transform_14, window_bounds = array<i64: 1, 1, 32>}, {transform_indices = @transform_15, window_bounds = array<i64: 1, 32, 64>}, {transform_indices = @transform_16, window_bounds = array<i64: 1, 1, 64>}, {transform_indices = @transform_17, window_bounds = array<i64: 1, 64, 32>}, {transform_indices = @transform_18, window_bounds = array<i64: 1, 1, 32>}, {transform_indices = @transform_19, window_bounds = array<i64: 1, 1, 32>}, {transform_indices = @transform_20, window_bounds = array<i64: 1, 1, 32>}, {pipeline_mode = #tpu.pipeline_mode<synchronous>, transform_indices = @transform_21, window_bounds = array<i64: 1, 32>}, {pipeline_mode = #tpu.pipeline_mode<synchronous>, transform_indices = @transform_22, window_bounds = array<i64: 1, 32>}, {transform_indices = @transform_23, window_bounds = array<i64: 1, 8, 32>}]} {
    %c0 = arith.constant 0 : index
    %c0_0 = arith.constant 0 : index
    %0 = vector.load %arg4[%c0, %c0_0] : memref<8x8xf32, #tpu.memory_space<vmem>>, vector<8x8xf32>
    %c0_i32 = arith.constant 0 : i32
    %1 = arith.cmpi eq, %arg1, %c0_i32 : i32
    %2 = arith.extui %1 : i1 to i32
    %c0_i32_1 = arith.constant 0 : i32
    %3 = arith.cmpi ne, %2, %c0_i32_1 : i32
    scf.if %3 {
      %c0_94 = arith.constant 0 : index
      %c0_95 = arith.constant 0 : index
      %c0_96 = arith.constant 0 : index
      %208 = vector.load %arg2[%c0_94, %c0_95, %c0_96] : memref<1x8x32xf32, #tpu.memory_space<vmem>>, vector<1x8x32xf32>
      %209 = vector.shape_cast %208 : vector<1x8x32xf32> to vector<8x32xf32>
      %c0_97 = arith.constant 0 : index
      %c0_98 = arith.constant 0 : index
      %210 = vector.load %arg26[%c0_97, %c0_98] : memref<8x32xf32, #tpu.memory_space<vmem>>, vector<8x32xf32>
      tpu.vector_store %arg26[%c0_97, %c0_98], %209 {strides = array<i32>} : memref<8x32xf32, #tpu.memory_space<vmem>>, vector<8x32xf32>,
    } else {
    }
    %c0_2 = arith.constant 0 : index
    %c0_3 = arith.constant 0 : index
    %4 = vector.load %arg26[%c0_2, %c0_3] : memref<8x32xf32, #tpu.memory_space<vmem>>, vector<8x32xf32>
    %c0_4 = arith.constant 0 : index
    %c0_5 = arith.constant 0 : index
    %c0_6 = arith.constant 0 : index
    %5 = vector.load %arg5[%c0_4, %c0_5, %c0_6] : memref<1x32x96xbf16, #tpu.memory_space<vmem>>, vector<1x32x96xbf16>
    %6 = vector.shape_cast %5 : vector<1x32x96xbf16> to vector<32x96xbf16>
    %c0_7 = arith.constant 0 : index
    %c0_8 = arith.constant 0 : index
    %c0_9 = arith.constant 0 : index
    %7 = vector.load %arg6[%c0_7, %c0_8, %c0_9] : memref<1x1x96xf32, #tpu.memory_space<vmem>>, vector<1x1x96xf32>
    %8 = vector.shape_cast %7 : vector<1x1x96xf32> to vector<1x96xf32>
    %c0_10 = arith.constant 0 : index
    %c0_11 = arith.constant 0 : index
    %c0_12 = arith.constant 0 : index
    %9 = vector.load %arg7[%c0_10, %c0_11, %c0_12] : memref<1x32x32xbf16, #tpu.memory_space<vmem>>, vector<1x32x32xbf16>
    %10 = vector.shape_cast %9 : vector<1x32x32xbf16> to vector<32x32xbf16>
    %c0_13 = arith.constant 0 : index
    %c0_14 = arith.constant 0 : index
    %c0_15 = arith.constant 0 : index
    %11 = vector.load %arg8[%c0_13, %c0_14, %c0_15] : memref<1x1x32xf32, #tpu.memory_space<vmem>>, vector<1x1x32xf32>
    %12 = vector.shape_cast %11 : vector<1x1x32xf32> to vector<1x32xf32>
    %c0_16 = arith.constant 0 : index
    %c0_17 = arith.constant 0 : index
    %c0_18 = arith.constant 0 : index
    %13 = vector.load %arg9[%c0_16, %c0_17, %c0_18] : memref<1x1x32xf32, #tpu.memory_space<vmem>>, vector<1x1x32xf32>
    %14 = vector.shape_cast %13 : vector<1x1x32xf32> to vector<1x32xf32>
    %c0_19 = arith.constant 0 : index
    %c0_20 = arith.constant 0 : index
    %c0_21 = arith.constant 0 : index
    %15 = vector.load %arg10[%c0_19, %c0_20, %c0_21] : memref<1x1x32xf32, #tpu.memory_space<vmem>>, vector<1x1x32xf32>
    %16 = vector.shape_cast %15 : vector<1x1x32xf32> to vector<1x32xf32>
    %17 = arith.truncf %4 : vector<8x32xf32> to vector<8x32xbf16>
    %cst = arith.constant dense<0.000000e+00> : vector<8x96xf32>
    %18 = tpu.matmul %17, %6, %cst {dimension_numbers = #tpu.dot_dimension_numbers<[1], [0], [0], [1], [0, 0, 1, 1], [], []>} : vector<8x32xbf16>, vector<32x96xbf16>, vector<8x96xf32> -> vector<8x96xf32>
    %19 = vector.broadcast %8 : vector<1x96xf32> to vector<8x96xf32>
    %20 = arith.addf %18, %19 : vector<8x96xf32>
    %21 = vector.extract_strided_slice %20 {offsets = [0, 0], sizes = [8, 32], strides = [1, 1]} : vector<8x96xf32> to vector<8x32xf32>
    %22 = vector.extract_strided_slice %20 {offsets = [0, 32], sizes = [8, 32], strides = [1, 1]} : vector<8x96xf32> to vector<8x32xf32>
    %23 = vector.extract_strided_slice %20 {offsets = [0, 64], sizes = [8, 32], strides = [1, 1]} : vector<8x96xf32> to vector<8x32xf32>
    %24 = tpu.transpose %21, [1, 0] : vector<8x32xf32> -> vector<32x8xf32>
    %25 = vector.shape_cast %24 : vector<32x8xf32> to vector<4x8x8xf32>
    %26 = tpu.transpose %25, [0, 2, 1] : vector<4x8x8xf32> -> vector<4x8x8xf32>
    %27 = arith.truncf %26 : vector<4x8x8xf32> to vector<4x8x8xbf16>
    %28 = tpu.transpose %22, [1, 0] : vector<8x32xf32> -> vector<32x8xf32>
    %29 = vector.shape_cast %28 : vector<32x8xf32> to vector<4x8x8xf32>
    %30 = tpu.transpose %29, [0, 2, 1] : vector<4x8x8xf32> -> vector<4x8x8xf32>
    %31 = arith.truncf %30 : vector<4x8x8xf32> to vector<4x8x8xbf16>
    %32 = tpu.transpose %23, [1, 0] : vector<8x32xf32> -> vector<32x8xf32>
    %33 = vector.shape_cast %32 : vector<32x8xf32> to vector<4x8x8xf32>
    %34 = tpu.transpose %33, [0, 2, 1] : vector<4x8x8xf32> -> vector<4x8x8xf32>
    %35 = arith.truncf %34 : vector<4x8x8xf32> to vector<4x8x8xbf16>
    "tpu.trace_start"() <{level = 10 : i32, message = "hqd,hkd->hqk"}> : () -> ()
    %cst_22 = arith.constant dense<0.000000e+00> : vector<4x8x8xf32>
    %36 = tpu.matmul %27, %31, %cst_22 {dimension_numbers = #tpu.dot_dimension_numbers<[2], [2], [1], [1], [0, 0, 0, 1, 1, 1], [0], [0]>} : vector<4x8x8xbf16>, vector<4x8x8xbf16>, vector<4x8x8xf32> -> vector<4x8x8xf32>
    "tpu.trace_stop"() : () -> ()
    %37 = vector.shape_cast %0 : vector<8x8xf32> to vector<1x8x8xf32>
    %38 = vector.broadcast %37 : vector<1x8x8xf32> to vector<4x8x8xf32>
    %39 = arith.addf %36, %38 : vector<4x8x8xf32>
    %cst_23 = arith.constant dense<0xFF800000> : vector<4x8xf32>
    %40 = vector.multi_reduction <maximumf>, %39, %cst_23 [2] : vector<4x8x8xf32> to vector<4x8xf32>
    %41 = vector.shape_cast %40 : vector<4x8xf32> to vector<4x8x1xf32>
    %42 = vector.broadcast %41 : vector<4x8x1xf32> to vector<4x8x8xf32>
    %43 = arith.subf %39, %42 : vector<4x8x8xf32>
    %44 = math.exp %43 : vector<4x8x8xf32>
    %cst_24 = arith.constant dense<0.000000e+00> : vector<4x8xf32>
    %45 = vector.multi_reduction <add>, %44, %cst_24 [2] : vector<4x8x8xf32> to vector<4x8xf32>
    %46 = vector.shape_cast %45 : vector<4x8xf32> to vector<4x8x1xf32>
    %47 = tpu.reciprocal %46 {approx = true} : vector<4x8x1xf32> -> vector<4x8x1xf32>
    %48 = vector.broadcast %47 : vector<4x8x1xf32> to vector<4x8x8xf32>
    %49 = arith.mulf %44, %48 : vector<4x8x8xf32>
    %50 = arith.truncf %49 : vector<4x8x8xf32> to vector<4x8x8xbf16>
    "tpu.trace_start"() <{level = 10 : i32, message = "hqk,hkd->hqd"}> : () -> ()
    %cst_25 = arith.constant dense<0.000000e+00> : vector<4x8x8xf32>
    %51 = tpu.matmul %50, %35, %cst_25 {dimension_numbers = #tpu.dot_dimension_numbers<[2], [1], [1], [2], [0, 0, 0, 1, 1, 2], [0], [0]>} : vector<4x8x8xbf16>, vector<4x8x8xbf16>, vector<4x8x8xf32> -> vector<4x8x8xf32>
    "tpu.trace_stop"() : () -> ()
    %52 = tpu.transpose %51, [0, 2, 1] : vector<4x8x8xf32> -> vector<4x8x8xf32>
    %53 = vector.shape_cast %52 : vector<4x8x8xf32> to vector<32x8xf32>
    %54 = tpu.transpose %53, [1, 0] : vector<32x8xf32> -> vector<8x32xf32>
    %55 = arith.truncf %54 : vector<8x32xf32> to vector<8x32xbf16>
    %cst_26 = arith.constant dense<0.000000e+00> : vector<8x32xf32>
    %56 = tpu.matmul %55, %10, %cst_26 {dimension_numbers = #tpu.dot_dimension_numbers<[1], [0], [0], [1], [0, 0, 1, 1], [], []>} : vector<8x32xbf16>, vector<32x32xbf16>, vector<8x32xf32> -> vector<8x32xf32>
    %57 = vector.broadcast %12 : vector<1x32xf32> to vector<8x32xf32>
    %58 = arith.addf %56, %57 : vector<8x32xf32>
    %59 = arith.addf %4, %58 : vector<8x32xf32>
    %cst_27 = arith.constant dense<0.000000e+00> : vector<8xf32>
    %60 = vector.multi_reduction <add>, %59, %cst_27 [1] : vector<8x32xf32> to vector<8xf32>
    %61 = vector.shape_cast %60 : vector<8xf32> to vector<8x1xf32>
    %cst_28 = arith.constant 3.200000e+01 : f32
    %62 = vector.broadcast %cst_28 : f32 to vector<8x1xf32>
    %63 = arith.divf %61, %62 : vector<8x1xf32>
    %64 = vector.broadcast %63 : vector<8x1xf32> to vector<8x32xf32>
    %65 = arith.subf %59, %64 : vector<8x32xf32>
    %66 = arith.mulf %65, %65 : vector<8x32xf32>
    %cst_29 = arith.constant dense<0.000000e+00> : vector<8xf32>
    %67 = vector.multi_reduction <add>, %66, %cst_29 [1] : vector<8x32xf32> to vector<8xf32>
    %68 = vector.shape_cast %67 : vector<8xf32> to vector<8x1xf32>
    %cst_30 = arith.constant 3.200000e+01 : f32
    %69 = vector.broadcast %cst_30 : f32 to vector<8x1xf32>
    %70 = arith.divf %68, %69 : vector<8x1xf32>
    %cst_31 = arith.constant 9.99999974E-6 : f32
    %71 = vector.broadcast %cst_31 : f32 to vector<8x1xf32>
    %72 = arith.addf %70, %71 : vector<8x1xf32>
    %73 = math.rsqrt %72 : vector<8x1xf32>
    %74 = vector.broadcast %73 : vector<8x1xf32> to vector<8x32xf32>
    %75 = arith.mulf %65, %74 : vector<8x32xf32>
    %76 = vector.broadcast %14 : vector<1x32xf32> to vector<8x32xf32>
    %77 = arith.mulf %75, %76 : vector<8x32xf32>
    %78 = vector.broadcast %16 : vector<1x32xf32> to vector<8x32xf32>
    %79 = arith.addf %77, %78 : vector<8x32xf32>
    %c0_32 = arith.constant 0 : index
    %c0_33 = arith.constant 0 : index
    %c0_34 = arith.constant 0 : index
    %80 = vector.load %arg3[%c0_32, %c0_33, %c0_34] : memref<1x8x32xf32, #tpu.memory_space<vmem>>, vector<1x8x32xf32>
    %81 = vector.shape_cast %80 : vector<1x8x32xf32> to vector<8x32xf32>
    %c0_35 = arith.constant 0 : index
    %c0_36 = arith.constant 0 : index
    %c0_37 = arith.constant 0 : index
    %82 = vector.load %arg11[%c0_35, %c0_36, %c0_37] : memref<1x32x96xbf16, #tpu.memory_space<vmem>>, vector<1x32x96xbf16>
    %83 = vector.shape_cast %82 : vector<1x32x96xbf16> to vector<32x96xbf16>
    %c0_38 = arith.constant 0 : index
    %c0_39 = arith.constant 0 : index
    %c0_40 = arith.constant 0 : index
    %84 = vector.load %arg12[%c0_38, %c0_39, %c0_40] : memref<1x1x96xf32, #tpu.memory_space<vmem>>, vector<1x1x96xf32>
    %85 = vector.shape_cast %84 : vector<1x1x96xf32> to vector<1x96xf32>
    %c0_41 = arith.constant 0 : index
    %c0_42 = arith.constant 0 : index
    %c0_43 = arith.constant 0 : index
    %86 = vector.load %arg13[%c0_41, %c0_42, %c0_43] : memref<1x32x32xbf16, #tpu.memory_space<vmem>>, vector<1x32x32xbf16>
    %87 = vector.shape_cast %86 : vector<1x32x32xbf16> to vector<32x32xbf16>
    %c0_44 = arith.constant 0 : index
    %c0_45 = arith.constant 0 : index
    %c0_46 = arith.constant 0 : index
    %88 = vector.load %arg14[%c0_44, %c0_45, %c0_46] : memref<1x1x32xf32, #tpu.memory_space<vmem>>, vector<1x1x32xf32>
    %89 = vector.shape_cast %88 : vector<1x1x32xf32> to vector<1x32xf32>
    %c0_47 = arith.constant 0 : index
    %c0_48 = arith.constant 0 : index
    %c0_49 = arith.constant 0 : index
    %90 = vector.load %arg15[%c0_47, %c0_48, %c0_49] : memref<1x1x32xf32, #tpu.memory_space<vmem>>, vector<1x1x32xf32>
    %91 = vector.shape_cast %90 : vector<1x1x32xf32> to vector<1x32xf32>
    %c0_50 = arith.constant 0 : index
    %c0_51 = arith.constant 0 : index
    %c0_52 = arith.constant 0 : index
    %92 = vector.load %arg16[%c0_50, %c0_51, %c0_52] : memref<1x1x32xf32, #tpu.memory_space<vmem>>, vector<1x1x32xf32>
    %93 = vector.shape_cast %92 : vector<1x1x32xf32> to vector<1x32xf32>
    %94 = arith.truncf %79 : vector<8x32xf32> to vector<8x32xbf16>
    %95 = arith.truncf %81 : vector<8x32xf32> to vector<8x32xbf16>
    %96 = vector.extract_strided_slice %83 {offsets = [0, 0], sizes = [32, 32], strides = [1, 1]} : vector<32x96xbf16> to vector<32x32xbf16>
    %cst_53 = arith.constant dense<0.000000e+00> : vector<8x32xf32>
    %97 = tpu.matmul %94, %96, %cst_53 {dimension_numbers = #tpu.dot_dimension_numbers<[1], [0], [0], [1], [0, 0, 1, 1], [], []>} : vector<8x32xbf16>, vector<32x32xbf16>, vector<8x32xf32> -> vector<8x32xf32>
    %98 = vector.extract_strided_slice %85 {offsets = [0, 0], sizes = [1, 32], strides = [1, 1]} : vector<1x96xf32> to vector<1x32xf32>
    %99 = vector.broadcast %98 : vector<1x32xf32> to vector<8x32xf32>
    %100 = arith.addf %97, %99 : vector<8x32xf32>
    %101 = vector.extract_strided_slice %83 {offsets = [0, 32], sizes = [32, 64], strides = [1, 1]} : vector<32x96xbf16> to vector<32x64xbf16>
    %cst_54 = arith.constant dense<0.000000e+00> : vector<8x64xf32>
    %102 = tpu.matmul %95, %101, %cst_54 {dimension_numbers = #tpu.dot_dimension_numbers<[1], [0], [0], [1], [0, 0, 1, 1], [], []>} : vector<8x32xbf16>, vector<32x64xbf16>, vector<8x64xf32> -> vector<8x64xf32>
    %103 = vector.extract_strided_slice %85 {offsets = [0, 32], sizes = [1, 64], strides = [1, 1]} : vector<1x96xf32> to vector<1x64xf32>
    %104 = vector.broadcast %103 : vector<1x64xf32> to vector<8x64xf32>
    %105 = arith.addf %102, %104 : vector<8x64xf32>
    %106 = vector.extract_strided_slice %105 {offsets = [0, 0], sizes = [8, 32], strides = [1, 1]} : vector<8x64xf32> to vector<8x32xf32>
    %107 = vector.extract_strided_slice %105 {offsets = [0, 32], sizes = [8, 32], strides = [1, 1]} : vector<8x64xf32> to vector<8x32xf32>
    %108 = tpu.transpose %100, [1, 0] : vector<8x32xf32> -> vector<32x8xf32>
    %109 = vector.shape_cast %108 : vector<32x8xf32> to vector<4x8x8xf32>
    %110 = tpu.transpose %109, [0, 2, 1] : vector<4x8x8xf32> -> vector<4x8x8xf32>
    %111 = arith.truncf %110 : vector<4x8x8xf32> to vector<4x8x8xbf16>
    %112 = tpu.transpose %106, [1, 0] : vector<8x32xf32> -> vector<32x8xf32>
    %113 = vector.shape_cast %112 : vector<32x8xf32> to vector<4x8x8xf32>
    %114 = tpu.transpose %113, [0, 2, 1] : vector<4x8x8xf32> -> vector<4x8x8xf32>
    %115 = arith.truncf %114 : vector<4x8x8xf32> to vector<4x8x8xbf16>
    %116 = tpu.transpose %107, [1, 0] : vector<8x32xf32> -> vector<32x8xf32>
    %117 = vector.shape_cast %116 : vector<32x8xf32> to vector<4x8x8xf32>
    %118 = tpu.transpose %117, [0, 2, 1] : vector<4x8x8xf32> -> vector<4x8x8xf32>
    %119 = arith.truncf %118 : vector<4x8x8xf32> to vector<4x8x8xbf16>
    "tpu.trace_start"() <{level = 10 : i32, message = "hqd,hkd->hqk"}> : () -> ()
    %cst_55 = arith.constant dense<0.000000e+00> : vector<4x8x8xf32>
    %120 = tpu.matmul %111, %115, %cst_55 {dimension_numbers = #tpu.dot_dimension_numbers<[2], [2], [1], [1], [0, 0, 0, 1, 1, 1], [0], [0]>} : vector<4x8x8xbf16>, vector<4x8x8xbf16>, vector<4x8x8xf32> -> vector<4x8x8xf32>
    "tpu.trace_stop"() : () -> ()
    %cst_56 = arith.constant dense<0xFF800000> : vector<4x8xf32>
    %121 = vector.multi_reduction <maximumf>, %120, %cst_56 [2] : vector<4x8x8xf32> to vector<4x8xf32>
    %122 = vector.shape_cast %121 : vector<4x8xf32> to vector<4x8x1xf32>
    %123 = vector.broadcast %122 : vector<4x8x1xf32> to vector<4x8x8xf32>
    %124 = arith.subf %120, %123 : vector<4x8x8xf32>
    %125 = math.exp %124 : vector<4x8x8xf32>
    %cst_57 = arith.constant dense<0.000000e+00> : vector<4x8xf32>
    %126 = vector.multi_reduction <add>, %125, %cst_57 [2] : vector<4x8x8xf32> to vector<4x8xf32>
    %127 = vector.shape_cast %126 : vector<4x8xf32> to vector<4x8x1xf32>
    %128 = tpu.reciprocal %127 {approx = true} : vector<4x8x1xf32> -> vector<4x8x1xf32>
    %129 = vector.broadcast %128 : vector<4x8x1xf32> to vector<4x8x8xf32>
    %130 = arith.mulf %125, %129 : vector<4x8x8xf32>
    %131 = arith.truncf %130 : vector<4x8x8xf32> to vector<4x8x8xbf16>
    "tpu.trace_start"() <{level = 10 : i32, message = "hqk,hkd->hqd"}> : () -> ()
    %cst_58 = arith.constant dense<0.000000e+00> : vector<4x8x8xf32>
    %132 = tpu.matmul %131, %119, %cst_58 {dimension_numbers = #tpu.dot_dimension_numbers<[2], [1], [1], [2], [0, 0, 0, 1, 1, 2], [0], [0]>} : vector<4x8x8xbf16>, vector<4x8x8xbf16>, vector<4x8x8xf32> -> vector<4x8x8xf32>
    "tpu.trace_stop"() : () -> ()
    %133 = tpu.transpose %132, [0, 2, 1] : vector<4x8x8xf32> -> vector<4x8x8xf32>
    %134 = vector.shape_cast %133 : vector<4x8x8xf32> to vector<32x8xf32>
    %135 = tpu.transpose %134, [1, 0] : vector<32x8xf32> -> vector<8x32xf32>
    %136 = arith.truncf %135 : vector<8x32xf32> to vector<8x32xbf16>
    %cst_59 = arith.constant dense<0.000000e+00> : vector<8x32xf32>
    %137 = tpu.matmul %136, %87, %cst_59 {dimension_numbers = #tpu.dot_dimension_numbers<[1], [0], [0], [1], [0, 0, 1, 1], [], []>} : vector<8x32xbf16>, vector<32x32xbf16>, vector<8x32xf32> -> vector<8x32xf32>
    %138 = vector.broadcast %89 : vector<1x32xf32> to vector<8x32xf32>
    %139 = arith.addf %137, %138 : vector<8x32xf32>
    %140 = arith.addf %79, %139 : vector<8x32xf32>
    %cst_60 = arith.constant dense<0.000000e+00> : vector<8xf32>
    %141 = vector.multi_reduction <add>, %140, %cst_60 [1] : vector<8x32xf32> to vector<8xf32>
    %142 = vector.shape_cast %141 : vector<8xf32> to vector<8x1xf32>
    %cst_61 = arith.constant 3.200000e+01 : f32
    %143 = vector.broadcast %cst_61 : f32 to vector<8x1xf32>
    %144 = arith.divf %142, %143 : vector<8x1xf32>
    %145 = vector.broadcast %144 : vector<8x1xf32> to vector<8x32xf32>
    %146 = arith.subf %140, %145 : vector<8x32xf32>
    %147 = arith.mulf %146, %146 : vector<8x32xf32>
    %cst_62 = arith.constant dense<0.000000e+00> : vector<8xf32>
    %148 = vector.multi_reduction <add>, %147, %cst_62 [1] : vector<8x32xf32> to vector<8xf32>
    %149 = vector.shape_cast %148 : vector<8xf32> to vector<8x1xf32>
    %cst_63 = arith.constant 3.200000e+01 : f32
    %150 = vector.broadcast %cst_63 : f32 to vector<8x1xf32>
    %151 = arith.divf %149, %150 : vector<8x1xf32>
    %cst_64 = arith.constant 9.99999974E-6 : f32
    %152 = vector.broadcast %cst_64 : f32 to vector<8x1xf32>
    %153 = arith.addf %151, %152 : vector<8x1xf32>
    %154 = math.rsqrt %153 : vector<8x1xf32>
    %155 = vector.broadcast %154 : vector<8x1xf32> to vector<8x32xf32>
    %156 = arith.mulf %146, %155 : vector<8x32xf32>
    %157 = vector.broadcast %91 : vector<1x32xf32> to vector<8x32xf32>
    %158 = arith.mulf %156, %157 : vector<8x32xf32>
    %159 = vector.broadcast %93 : vector<1x32xf32> to vector<8x32xf32>
    %160 = arith.addf %158, %159 : vector<8x32xf32>
    %161 = arith.truncf %160 : vector<8x32xf32> to vector<8x32xbf16>
    %c0_65 = arith.constant 0 : index
    %c0_66 = arith.constant 0 : index
    %c0_67 = arith.constant 0 : index
    %162 = vector.load %arg17[%c0_65, %c0_66, %c0_67] : memref<1x32x64xbf16, #tpu.memory_space<vmem>>, vector<1x32x64xbf16>
    %163 = vector.shape_cast %162 : vector<1x32x64xbf16> to vector<32x64xbf16>
    %cst_68 = arith.constant dense<0.000000e+00> : vector<8x64xf32>
    %164 = tpu.matmul %161, %163, %cst_68 {dimension_numbers = #tpu.dot_dimension_numbers<[1], [0], [0], [1], [0, 0, 1, 1], [], []>} : vector<8x32xbf16>, vector<32x64xbf16>, vector<8x64xf32> -> vector<8x64xf32>
    %c0_69 = arith.constant 0 : index
    %c0_70 = arith.constant 0 : index
    %c0_71 = arith.constant 0 : index
    %165 = vector.load %arg18[%c0_69, %c0_70, %c0_71] : memref<1x1x64xf32, #tpu.memory_space<vmem>>, vector<1x1x64xf32>
    %166 = vector.shape_cast %165 : vector<1x1x64xf32> to vector<1x64xf32>
    %167 = vector.broadcast %166 : vector<1x64xf32> to vector<8x64xf32>
    %168 = arith.addf %164, %167 : vector<8x64xf32>
    %cst_72 = arith.constant 0.000000e+00 : f32
    %169 = vector.broadcast %cst_72 : f32 to vector<8x64xf32>
    %170 = arith.maximumf %168, %169 : vector<8x64xf32>
    %171 = arith.truncf %170 : vector<8x64xf32> to vector<8x64xbf16>
    %c0_73 = arith.constant 0 : index
    %c0_74 = arith.constant 0 : index
    %c0_75 = arith.constant 0 : index
    %172 = vector.load %arg19[%c0_73, %c0_74, %c0_75] : memref<1x64x32xbf16, #tpu.memory_space<vmem>>, vector<1x64x32xbf16>
    %173 = vector.shape_cast %172 : vector<1x64x32xbf16> to vector<64x32xbf16>
    %cst_76 = arith.constant dense<0.000000e+00> : vector<8x32xf32>
    %174 = tpu.matmul %171, %173, %cst_76 {dimension_numbers = #tpu.dot_dimension_numbers<[1], [0], [0], [1], [0, 0, 1, 1], [], []>} : vector<8x64xbf16>, vector<64x32xbf16>, vector<8x32xf32> -> vector<8x32xf32>
    %c0_77 = arith.constant 0 : index
    %c0_78 = arith.constant 0 : index
    %c0_79 = arith.constant 0 : index
    %175 = vector.load %arg20[%c0_77, %c0_78, %c0_79] : memref<1x1x32xf32, #tpu.memory_space<vmem>>, vector<1x1x32xf32>
    %176 = vector.shape_cast %175 : vector<1x1x32xf32> to vector<1x32xf32>
    %177 = vector.broadcast %176 : vector<1x32xf32> to vector<8x32xf32>
    %178 = arith.addf %174, %177 : vector<8x32xf32>
    %c0_80 = arith.constant 0 : index
    %c0_81 = arith.constant 0 : index
    %c0_82 = arith.constant 0 : index
    %179 = vector.load %arg21[%c0_80, %c0_81, %c0_82] : memref<1x1x32xf32, #tpu.memory_space<vmem>>, vector<1x1x32xf32>
    %180 = vector.shape_cast %179 : vector<1x1x32xf32> to vector<1x32xf32>
    %c0_83 = arith.constant 0 : index
    %c0_84 = arith.constant 0 : index
    %c0_85 = arith.constant 0 : index
    %181 = vector.load %arg22[%c0_83, %c0_84, %c0_85] : memref<1x1x32xf32, #tpu.memory_space<vmem>>, vector<1x1x32xf32>
    %182 = vector.shape_cast %181 : vector<1x1x32xf32> to vector<1x32xf32>
    %183 = arith.addf %160, %178 : vector<8x32xf32>
    %cst_86 = arith.constant dense<0.000000e+00> : vector<8xf32>
    %184 = vector.multi_reduction <add>, %183, %cst_86 [1] : vector<8x32xf32> to vector<8xf32>
    %185 = vector.shape_cast %184 : vector<8xf32> to vector<8x1xf32>
    %cst_87 = arith.constant 3.200000e+01 : f32
    %186 = vector.broadcast %cst_87 : f32 to vector<8x1xf32>
    %187 = arith.divf %185, %186 : vector<8x1xf32>
    %188 = vector.broadcast %187 : vector<8x1xf32> to vector<8x32xf32>
    %189 = arith.subf %183, %188 : vector<8x32xf32>
    %190 = arith.mulf %189, %189 : vector<8x32xf32>
    %cst_88 = arith.constant dense<0.000000e+00> : vector<8xf32>
    %191 = vector.multi_reduction <add>, %190, %cst_88 [1] : vector<8x32xf32> to vector<8xf32>
    %192 = vector.shape_cast %191 : vector<8xf32> to vector<8x1xf32>
    %cst_89 = arith.constant 3.200000e+01 : f32
    %193 = vector.broadcast %cst_89 : f32 to vector<8x1xf32>
    %194 = arith.divf %192, %193 : vector<8x1xf32>
    %cst_90 = arith.constant 9.99999974E-6 : f32
    %195 = vector.broadcast %cst_90 : f32 to vector<8x1xf32>
    %196 = arith.addf %194, %195 : vector<8x1xf32>
    %197 = math.rsqrt %196 : vector<8x1xf32>
    %198 = vector.broadcast %197 : vector<8x1xf32> to vector<8x32xf32>
    %199 = arith.mulf %189, %198 : vector<8x32xf32>
    %200 = vector.broadcast %180 : vector<1x32xf32> to vector<8x32xf32>
    %201 = arith.mulf %199, %200 : vector<8x32xf32>
    %202 = vector.broadcast %182 : vector<1x32xf32> to vector<8x32xf32>
    %203 = arith.addf %201, %202 : vector<8x32xf32>
    %c0_91 = arith.constant 0 : index
    %c0_92 = arith.constant 0 : index
    %204 = vector.load %arg26[%c0_91, %c0_92] : memref<8x32xf32, #tpu.memory_space<vmem>>, vector<8x32xf32>
    tpu.vector_store %arg26[%c0_91, %c0_92], %203 {strides = array<i32>} : memref<8x32xf32, #tpu.memory_space<vmem>>, vector<8x32xf32>,
    %c1_i32 = arith.constant 1 : i32
    %205 = arith.cmpi eq, %arg1, %c1_i32 : i32
    %206 = arith.extui %205 : i1 to i32
    %c0_i32_93 = arith.constant 0 : i32
    %207 = arith.cmpi ne, %206, %c0_i32_93 : i32
    scf.if %207 {
      %cst_94 = arith.constant dense<0.000000e+00> : vector<8xf32>
      %208 = vector.multi_reduction <add>, %203, %cst_94 [1] : vector<8x32xf32> to vector<8xf32>
      %209 = vector.shape_cast %208 : vector<8xf32> to vector<8x1xf32>
      %cst_95 = arith.constant 3.200000e+01 : f32
      %210 = vector.broadcast %cst_95 : f32 to vector<8x1xf32>
      %211 = arith.divf %209, %210 : vector<8x1xf32>
      %212 = vector.broadcast %211 : vector<8x1xf32> to vector<8x32xf32>
      %213 = arith.subf %203, %212 : vector<8x32xf32>
      %214 = arith.mulf %213, %213 : vector<8x32xf32>
      %cst_96 = arith.constant dense<0.000000e+00> : vector<8xf32>
      %215 = vector.multi_reduction <add>, %214, %cst_96 [1] : vector<8x32xf32> to vector<8xf32>
      %216 = vector.shape_cast %215 : vector<8xf32> to vector<8x1xf32>
      %cst_97 = arith.constant 3.200000e+01 : f32
      %217 = vector.broadcast %cst_97 : f32 to vector<8x1xf32>
      %218 = arith.divf %216, %217 : vector<8x1xf32>
      %cst_98 = arith.constant 9.99999974E-6 : f32
      %219 = vector.broadcast %cst_98 : f32 to vector<8x1xf32>
      %220 = arith.addf %218, %219 : vector<8x1xf32>
      %221 = math.rsqrt %220 : vector<8x1xf32>
      %222 = vector.broadcast %221 : vector<8x1xf32> to vector<8x32xf32>
      %223 = arith.mulf %213, %222 : vector<8x32xf32>
      %c0_99 = arith.constant 0 : index
      %c0_100 = arith.constant 0 : index
      %224 = vector.load %arg23[%c0_99, %c0_100] : memref<1x32xf32, #tpu.memory_space<vmem>>, vector<1x32xf32>
      %225 = vector.broadcast %224 : vector<1x32xf32> to vector<8x32xf32>
      %226 = arith.mulf %223, %225 : vector<8x32xf32>
      %c0_101 = arith.constant 0 : index
      %c0_102 = arith.constant 0 : index
      %227 = vector.load %arg24[%c0_101, %c0_102] : memref<1x32xf32, #tpu.memory_space<vmem>>, vector<1x32xf32>
      %228 = vector.broadcast %227 : vector<1x32xf32> to vector<8x32xf32>
      %229 = arith.addf %226, %228 : vector<8x32xf32>
      %c0_103 = arith.constant 0 : index
      %c0_104 = arith.constant 0 : index
      %c0_105 = arith.constant 0 : index
      %230 = vector.load %arg25[%c0_103, %c0_104, %c0_105] : memref<1x8x32xf32, #tpu.memory_space<vmem>>, vector<1x8x32xf32>
      %231 = vector.shape_cast %230 : vector<1x8x32xf32> to vector<8x32xf32>
      %232 = vector.shape_cast %229 : vector<8x32xf32> to vector<1x8x32xf32>
      tpu.vector_store %arg25[%c0_103, %c0_104, %c0_105], %232 {strides = array<i32>} : memref<1x8x32xf32, #tpu.memory_space<vmem>>, vector<1x8x32xf32>,
    } else {
    }
    return
  }
  func.func @transform_0(%arg0: i32, %arg1: i32) -> (i32, i32, i32) {
    %c0_i32 = arith.constant 0 : i32
    %c0_i32_0 = arith.constant 0 : i32
    %c0_i32_1 = arith.constant 0 : i32
    return %arg0, %c0_i32, %c0_i32_0 : i32, i32, i32
  }
  func.func @transform_1(%arg0: i32, %arg1: i32) -> (i32, i32, i32) {
    %c0_i32 = arith.constant 0 : i32
    %c0_i32_0 = arith.constant 0 : i32
    %c0_i32_1 = arith.constant 0 : i32
    return %arg0, %c0_i32, %c0_i32_0 : i32, i32, i32
  }
  func.func @transform_2(%arg0: i32, %arg1: i32) -> (i32, i32) {
    %c0_i32 = arith.constant 0 : i32
    %c0_i32_0 = arith.constant 0 : i32
    %c0_i32_1 = arith.constant 0 : i32
    return %c0_i32, %c0_i32_0 : i32, i32
  }
  func.func @transform_3(%arg0: i32, %arg1: i32) -> (i32, i32, i32) {
    %c0_i32 = arith.constant 0 : i32
    %c0_i32_0 = arith.constant 0 : i32
    %c0_i32_1 = arith.constant 0 : i32
    return %arg1, %c0_i32, %c0_i32_0 : i32, i32, i32
  }
  func.func @transform_4(%arg0: i32, %arg1: i32) -> (i32, i32, i32) {
    %c0_i32 = arith.constant 0 : i32
    %c0_i32_0 = arith.constant 0 : i32
    %c0_i32_1 = arith.constant 0 : i32
    return %arg1, %c0_i32, %c0_i32_0 : i32, i32, i32
  }
  func.func @transform_5(%arg0: i32, %arg1: i32) -> (i32, i32, i32) {
    %c0_i32 = arith.constant 0 : i32
    %c0_i32_0 = arith.constant 0 : i32
    %c0_i32_1 = arith.constant 0 : i32
    return %arg1, %c0_i32, %c0_i32_0 : i32, i32, i32
  }
  func.func @transform_6(%arg0: i32, %arg1: i32) -> (i32, i32, i32) {
    %c0_i32 = arith.constant 0 : i32
    %c0_i32_0 = arith.constant 0 : i32
    %c0_i32_1 = arith.constant 0 : i32
    return %arg1, %c0_i32, %c0_i32_0 : i32, i32, i32
  }
  func.func @transform_7(%arg0: i32, %arg1: i32) -> (i32, i32, i32) {
    %c0_i32 = arith.constant 0 : i32
    %c0_i32_0 = arith.constant 0 : i32
    %c0_i32_1 = arith.constant 0 : i32
    return %arg1, %c0_i32, %c0_i32_0 : i32, i32, i32
  }
  func.func @transform_8(%arg0: i32, %arg1: i32) -> (i32, i32, i32) {
    %c0_i32 = arith.constant 0 : i32
    %c0_i32_0 = arith.constant 0 : i32
    %c0_i32_1 = arith.constant 0 : i32
    return %arg1, %c0_i32, %c0_i32_0 : i32, i32, i32
  }
  func.func @transform_9(%arg0: i32, %arg1: i32) -> (i32, i32, i32) {
    %c0_i32 = arith.constant 0 : i32
    %c0_i32_0 = arith.constant 0 : i32
    %c0_i32_1 = arith.constant 0 : i32
    return %arg1, %c0_i32, %c0_i32_0 : i32, i32, i32
  }
  func.func @transform_10(%arg0: i32, %arg1: i32) -> (i32, i32, i32) {
    %c0_i32 = arith.constant 0 : i32
    %c0_i32_0 = arith.constant 0 : i32
    %c0_i32_1 = arith.constant 0 : i32
    return %arg1, %c0_i32, %c0_i32_0 : i32, i32, i32
  }
  func.func @transform_11(%arg0: i32, %arg1: i32) -> (i32, i32, i32) {
    %c0_i32 = arith.constant 0 : i32
    %c0_i32_0 = arith.constant 0 : i32
    %c0_i32_1 = arith.constant 0 : i32
    return %arg1, %c0_i32, %c0_i32_0 : i32, i32, i32
  }
  func.func @transform_12(%arg0: i32, %arg1: i32) -> (i32, i32, i32) {
    %c0_i32 = arith.constant 0 : i32
    %c0_i32_0 = arith.constant 0 : i32
    %c0_i32_1 = arith.constant 0 : i32
    return %arg1, %c0_i32, %c0_i32_0 : i32, i32, i32
  }
  func.func @transform_13(%arg0: i32, %arg1: i32) -> (i32, i32, i32) {
    %c0_i32 = arith.constant 0 : i32
    %c0_i32_0 = arith.constant 0 : i32
    %c0_i32_1 = arith.constant 0 : i32
    return %arg1, %c0_i32, %c0_i32_0 : i32, i32, i32
  }
  func.func @transform_14(%arg0: i32, %arg1: i32) -> (i32, i32, i32) {
    %c0_i32 = arith.constant 0 : i32
    %c0_i32_0 = arith.constant 0 : i32
    %c0_i32_1 = arith.constant 0 : i32
    return %arg1, %c0_i32, %c0_i32_0 : i32, i32, i32
  }
  func.func @transform_15(%arg0: i32, %arg1: i32) -> (i32, i32, i32) {
    %c0_i32 = arith.constant 0 : i32
    %c0_i32_0 = arith.constant 0 : i32
    %c0_i32_1 = arith.constant 0 : i32
    return %arg1, %c0_i32, %c0_i32_0 : i32, i32, i32
  }
  func.func @transform_16(%arg0: i32, %arg1: i32) -> (i32, i32, i32) {
    %c0_i32 = arith.constant 0 : i32
    %c0_i32_0 = arith.constant 0 : i32
    %c0_i32_1 = arith.constant 0 : i32
    return %arg1, %c0_i32, %c0_i32_0 : i32, i32, i32
  }
  func.func @transform_17(%arg0: i32, %arg1: i32) -> (i32, i32, i32) {
    %c0_i32 = arith.constant 0 : i32
    %c0_i32_0 = arith.constant 0 : i32
    %c0_i32_1 = arith.constant 0 : i32
    return %arg1, %c0_i32, %c0_i32_0 : i32, i32, i32
  }
  func.func @transform_18(%arg0: i32, %arg1: i32) -> (i32, i32, i32) {
    %c0_i32 = arith.constant 0 : i32
    %c0_i32_0 = arith.constant 0 : i32
    %c0_i32_1 = arith.constant 0 : i32
    return %arg1, %c0_i32, %c0_i32_0 : i32, i32, i32
  }
  func.func @transform_19(%arg0: i32, %arg1: i32) -> (i32, i32, i32) {
    %c0_i32 = arith.constant 0 : i32
    %c0_i32_0 = arith.constant 0 : i32
    %c0_i32_1 = arith.constant 0 : i32
    return %arg1, %c0_i32, %c0_i32_0 : i32, i32, i32
  }
  func.func @transform_20(%arg0: i32, %arg1: i32) -> (i32, i32, i32) {
    %c0_i32 = arith.constant 0 : i32
    %c0_i32_0 = arith.constant 0 : i32
    %c0_i32_1 = arith.constant 0 : i32
    return %arg1, %c0_i32, %c0_i32_0 : i32, i32, i32
  }
  func.func @transform_21(%arg0: i32, %arg1: i32) -> (i32, i32) {
    %c0_i32 = arith.constant 0 : i32
    %c0_i32_0 = arith.constant 0 : i32
    %c0_i32_1 = arith.constant 0 : i32
    return %c0_i32, %c0_i32_0 : i32, i32
  }
  func.func @transform_22(%arg0: i32, %arg1: i32) -> (i32, i32) {
    %c0_i32 = arith.constant 0 : i32
    %c0_i32_0 = arith.constant 0 : i32
    %c0_i32_1 = arith.constant 0 : i32
    return %c0_i32, %c0_i32_0 : i32, i32
  }
  func.func @transform_23(%arg0: i32, %arg1: i32) -> (i32, i32, i32) {
    %c0_i32 = arith.constant 0 : i32
    %c0_i32_0 = arith.constant 0 : i32
    %c0_i32_1 = arith.constant 0 : i32
    return %arg0, %c0_i32, %c0_i32_0 : i32, i32, i32
  }
}

</mosaic_0001>

<bundles_post_ra>
// kernel: transformer_decoder_forward.1
= control target key start
LH: loop header
LB: loop body
LE: loop exit
PB: predicated region body
PF: predicated region fallthrough
CT: control target
= control target key end

     0   :  { %s5402_s0 = inlined_call_operand.vmem [shape: f32[2,8,32], index: 0, kind: input, shape index: {}]   ;;  %s5403_s1 = inlined_call_operand.vmem [shape: f32[2,8,32], index: 1, kind: input, shape index: {}]   ;;  %s5404_s2 = inlined_call_operand.hbm [shape: f32[8,8], index: 2, kind: input, shape index: {}]   ;;  %s5405_s3 = inlined_call_operand.vmem [shape: bf16[2,32,96], index: 3, kind: input, shape index: {}]   ;;  %s5406_s4 = inlined_call_operand.hbm [shape: f32[2,1,96], index: 4, kind: input, shape index: {}]   ;;  %s5407_s5 = inlined_call_operand.vmem [shape: bf16[2,32,32], index: 5, kind: input, shape index: {}]   ;;  %s5408_s6 = inlined_call_operand.hbm [shape: f32[2,1,32], index: 6, kind: input, shape index: {}]   ;;  %s5409_s7 = inlined_call_operand.hbm [shape: f32[2,1,32], index: 7, kind: input, shape index: {}]   ;;  %s5410_s8 = inlined_call_operand.hbm [shape: f32[2,1,32], index: 8, kind: input, shape index: {}]   ;;  %s5411_s9 = inlined_call_operand.vmem [shape: bf16[2,32,96], index: 9, kind: input, shape index: {}]   ;;  %s5412_s10 = inlined_call_operand.hbm [shape: f32[2,1,96], index: 10, kind: input, shape index: {}]   ;;  %s5413_s11 = inlined_call_operand.hbm [shape: bf16[2,32,32], index: 11, kind: input, shape index: {}]   ;;  %s5414_s12 = inlined_call_operand.hbm [shape: f32[2,1,32], index: 12, kind: input, shape index: {}]   ;;  %s5415_s13 = inlined_call_operand.hbm [shape: f32[2,1,32], index: 13, kind: input, shape index: {}]   ;;  %s5416_s14 = inlined_call_operand.hbm [shape: f32[2,1,32], index: 14, kind: input, shape index: {}]   ;;  %s5417_s15 = inlined_call_operand.vmem [shape: bf16[2,32,64], index: 15, kind: input, shape index: {}]   ;;  %s5418_s16 = inlined_call_operand.hbm [shape: f32[2,1,64], index: 16, kind: input, shape index: {}]   ;;  %s5419_s17 = inlined_call_operand.vmem [shape: bf16[2,64,32], index: 17, kind: input, shape index: {}]   ;;  %s5420_s18 = inlined_call_operand.hbm [shape: f32[2,1,32], index: 18, kind: input, shape index: {}]   ;;  %s5421_s19 = inlined_call_operand.hbm [shape: f32[2,1,32], index: 19, kind: input, shape index: {}]   ;;  %s5422_s20 = inlined_call_operand.hbm [shape: f32[2,1,32], index: 20, kind: input, shape index: {}]   ;;  %s5423_s21 = inlined_call_operand.vmem [shape: f32[1,32], index: 21, kind: input, shape index: {}]   ;;  %s5424_s22 = inlined_call_operand.hbm [shape: f32[1,32], index: 22, kind: input, shape index: {}]   ;;  %s5425_s23 = inlined_call_operand.vmem [shape: f32[2,8,32], index: 23, kind: output, shape index: {}]  }
   0x1   :  { %5436 = sst [smem:[#allocation42_spill]] %s5402_s0 }
   0x2   :  { %5437 = sst [smem:[#allocation43_spill]] %s5403_s1 }
   0x3   :  { %5438 = sst [smem:[#allocation44_spill]] %s5404_s2 }
   0x4   :  { %5439 = sst [smem:[#allocation45_spill]] %s5405_s3 }
   0x5   :  { %5440 = sst [smem:[#allocation46_spill]] %s5406_s4 }
   0x6   :  { %5441 = sst [smem:[#allocation47_spill]] %s5407_s5 }
   0x7   :  { %5442 = sst [smem:[#allocation48_spill]] %s5408_s6 }
   0x8   :  { %5443 = sst [smem:[#allocation49_spill]] %s5409_s7 }
   0x9   :  { %5444 = sst [smem:[#allocation50_spill]] %s5410_s8 }
   0xa   :  { %5445 = sst [smem:[#allocation51_spill]] %s5411_s9 }
   0xb   :  { %5446 = sst [smem:[#allocation52_spill]] %s5412_s10 }
   0xc   :  { %5447 = sst [smem:[#allocation53_spill]] %s5413_s11 }
   0xd   :  { %5448 = sst [smem:[#allocation54_spill]] %s5414_s12 }
   0xe   :  { %5449 = sst [smem:[#allocation55_spill]] %s5415_s13 }
   0xf   :  { %5450 = sst [smem:[#allocation56_spill]] %s5416_s14 }
  0x10   :  { %5451 = sst [smem:[#allocation57_spill]] %s5417_s15 }
  0x11   :  { %5452 = sst [smem:[#allocation58_spill]] %s5418_s16 }
  0x12   :  { %5453 = sst [smem:[#allocation59_spill]] %s5419_s17 }
  0x13   :  { %5454 = sst [smem:[#allocation60_spill]] %s5420_s18 }
  0x14   :  { %5455 = sst [smem:[#allocation61_spill]] %s5423_s21 }
  0x15   :  { %5456 = sst [smem:[#allocation62_spill]] %s5424_s22 }
  0x16   :  { %5457 = sst [smem:[#allocation63_spill]] %s5425_s23 }
  0x17   :  { %28 = vsyncpa [#allocation4], 0 }
  0x18   :  { %29 = vsyncpa [#allocation6], 0 }
  0x19   :  { %31 = vsyncpa [#allocation6 + $0x1], 0 }
  0x1a   :  { %32 = vsyncpa [#allocation9], 0 }
  0x1b   :  { %34 = vsyncpa [#allocation9 + $0x1], 0 }
  0x1c   :  { %35 = vsyncpa [#allocation12], 0 }
  0x1d   :  { %37 = vsyncpa [#allocation12 + $0x1], 0 }
  0x1e   :  { %38 = vsyncpa [#allocation15], 0 }
  0x1f   :  { %40 = vsyncpa [#allocation15 + $0x1], 0 }
  0x20   :  { %41 = vsyncpa [#allocation18], 0 }
  0x21   :  { %43 = vsyncpa [#allocation18 + $0x1], 0 }
  0x22   :  { %44 = vsyncpa [#allocation21], 0 }
  0x23   :  { %46 = vsyncpa [#allocation21 + $0x1], 0 }
  0x24   :  { %47 = vsyncpa [#allocation24], 0 }
  0x25   :  { %49 = vsyncpa [#allocation24 + $0x1], 0  ;;  %s4898_s4 = smov 0   ;;  %s4900_s30 = smov 0  }
  0x26   :  { %s4902_s24 = smov 0   ;;  %s4904_s25 = smov 0  }
  0x27   :  { %s4906_s5 = smov 0   ;;  %s4908_s1 = smov 0  }
  0x28   :  { %s4910_s26 = smov 0   ;;  %s4912_s2 = smov 0  }
  0x29 LB: > { %5458 = sst [smem:[#allocation35_spill]] %s4749_s24  ;;  %s5427_s6 = sadd.s32 4294967295, %s4769_s2   ;;  %s4769_s2 = sphi %s4912_s2, %s55_s2   ;;  %s4765_s26 = sphi %s4910_s26, %s5518_s26   ;;  %s4761_s1 = sphi %s4908_s1, %s5522_s1   ;;  %s4757_s5 = sphi %s4906_s5, %s5516_s5   ;;  %s4753_s25 = sphi %s4904_s25, %s5521_s25   ;;  %s4749_s24 = sphi %s4902_s24, %s5515_s24   ;;  %s4745_s30 = sphi %s4900_s30, %s5520_s30   ;;  %s4741_s4 = sphi %s4898_s4, %s5519_s4  }
  0x2a   : > { %5459 = sst [smem:[#allocation36_spill]] %s4753_s25  ;;  %s64_s27 = sadd.s32 1, %s4761_s1 }
  0x2b   : > { %5460 = sst [smem:[#allocation37_spill]] %s4757_s5  ;;  %p65_p0 = scmp.ge.s32.totalorder %s64_s27, 2 }
  0x2c   : > { %5461 = sst [smem:[#allocation38_spill]] %s4765_s26  ;;  %s67_s7 = sadd.s32 1, %s4765_s26 }
  0x2d   : > { %s173_s28 = sadd.s32 1, %s4749_s24  ;;  %p180_p1 = scmp.ne.s32.totalorder %s4749_s24, %s4745_s30 }
  0x2e   : > { %s5524_s27 = smov (%p65_p0, %s64_s27), 0  ;;  %s5526_s7 = smov (!%p65_p0, %s67_s7), %s4765_s26 }
  0x2f   : > { %5462 = sst [smem:[#allocation39_spill]] %s5524_s27  ;;  %s170_s29 = ssub.s32 %s4761_s1, %s5524_s27 }
  0x30   : > { %p181_p2 = scmp.eq.s32.totalorder %s4769_s2, 0  ;;  %p69_p3 = scmp.ge.s32.totalorder %s5526_s7, 2 }
  0x31   : > { %p171_p4 = scmp.eq.s32.totalorder %s170_s29, 0  ;;  %p186_p6 = scmp.ne.s32.totalorder %s4745_s30, %s4741_s4 }
  0x32   : > { %p4948_p5 = por %p181_p2, %p180_p1  ;;  %s5528_s7 = smov (%p69_p3, %s5526_s7), 0 }
  0x33   : > { %5464 = sst [smem:[#allocation40_spill]] %s5528_s7  ;;  %p4960_p7 = scmp.eq.s32.totalorder %s5427_s6, 0 }
  0x34   : > { %s4956_s0 = scalar_select %p171_p4, %s4749_s24, %s173_s28  }
  0x35   : > { %p3840_p8 = scmp.ge.s32.totalorder %s4769_s2, 1  ;;  %p681_p9 = scmp.lt.s32.totalorder %s4769_s2, 5 }
  0x36   : > { %5465 = sst [smem:[#allocation41_spill]] %s4956_s0  ;;  %p4968_p10 = por %p4960_p7, %p186_p6 }
  0x37   : > { %p4972_p11 = pnand %p3840_p8, %p681_p9  ;;  %s5469_s27 = sld [smem:[#allocation44_spill]] }
  0x38   : > { %s5470_s22 = sld [smem:[#allocation62_spill]]  ;;  %s4771_s17 = smov [#allocation3]  }
  0x39   : > { %p4001_p12 = pneg %p4972_p11  ;;  %s695_s15 = sshll.u32 %s4771_s17, 4  ;;  %s696_s15 = int_to_ptr.vmem [resolvable:$true] %s695_s15 }
  0x3a   : > { %s4772_s9 = smov [#allocation25]   ;;  %p3843_p0 = scmp.ge.s32.totalorder %s4769_s2, 4 }
  0x3b   : > { %p4002_p13 = pnand %p4001_p12, %p4960_p7  ;;  %s710_s25 = sshll.u32 %s4772_s9, 4  ;;  %s711_s25 = int_to_ptr.vmem [resolvable:$true] %s710_s25 }
  0x3c   : > { %717 = sbr.rel (%p3843_p0) target bundleno = 117 (0x75), region = 28  ;;  %s4988_s26 = sand.u32 (!%p3843_p0), 1, %s4769_s2  }
  0x3d   : > { %s693_s6 = sshll.u32 %s5469_s27, 4  ;;  %s4991_s17 = sand.u32 (!%p3843_p0), 1, %s4749_s24   ;;  %s694_s6 = int_to_ptr.hbm [resolvable:$true] %s693_s6 }
  0x3e   : > { %s708_s23 = sshll.u32 %s5470_s22, 4  ;;  %s5471_s7 = sld [smem:[#allocation46_spill]] (!%p3843_p0)  ;;  %s709_s23 = int_to_ptr.hbm [resolvable:$true] %s708_s23 }
  0x3f   : > { %4004 = dma.hbm_to_vmem [thread:$0]  (!%p4002_p13), %s694_s6, 128, %s696_s15, [#allocation4]  }
  0x40   : > { %4007 = dma.hbm_to_vmem [thread:$0]  (!%p4002_p13), %s709_s23, 16, %s711_s25, [#allocation24]  }
  0x41   : > { %s746_s23 = scalar_lea.vmem [#allocation5], %s4991_s17  ;;  %s744_s0 = scalar_lea.sflag [#allocation6], %s4988_s26 }
  0x42   : > { %s753_s25 = sshll.u32 %s746_s23, 4  ;;  %s5472_s27 = sld [smem:[#allocation49_spill]]  ;;  %s754_s25 = int_to_ptr.vmem [resolvable:$true] %s753_s25 }
  0x43   : > { %s788_s24 = scalar_lea.vmem [#allocation8], %s4991_s17  ;;  %s5473_s10 = sld [smem:[#allocation52_spill]] }
  0x44   : > { %s749_s15 = scalar_lea.hbm %s5471_s7, %s4761_s1  ;;  %s795_s5 = sshll.u32 %s788_s24, 4  ;;  %s796_s5 = int_to_ptr.vmem [resolvable:$true] %s795_s5 }
  0x45   : > { %s751_s6 = sshll.u32 %s749_s15, 4  ;;  %s5432_s15 = scalar_lea.sflag [#allocation9], %s4988_s26  ;;  %s752_s6 = int_to_ptr.hbm [resolvable:$true] %s751_s6 }
  0x46   : > { %3971 = dma.hbm_to_vmem [thread:$0]  (%p4948_p5), %s752_s6, 16, %s754_s25, %s744_s0  }
  0x47   : > { %s830_s6 = scalar_lea.vmem [#allocation11], %s4991_s17  ;;  %s5434_s24 = scalar_lea.sflag [#allocation12], %s4988_s26 }
  0x48   : > { %s791_s9 = scalar_lea.hbm %s5472_s27, %s4761_s1  ;;  %s837_s28 = sshll.u32 %s830_s6, 4  ;;  %s838_s28 = int_to_ptr.vmem [resolvable:$true] %s837_s28 }
  0x49   : > { %s793_s7 = sshll.u32 %s791_s9, 4  ;;  %s833_s22 = scalar_lea.hbm %s5473_s10, %s4761_s1  ;;  %s794_s7 = int_to_ptr.hbm [resolvable:$true] %s793_s7 }
  0x4a   : > { %3973 = dma.hbm_to_vmem [thread:$0]  (%p4948_p5), %s794_s7, 16, %s796_s5, %s5432_s15  }
  0x4b   : > { %s835_s27 = sshll.u32 %s833_s22, 4  ;;  %s5474_s12 = sld [smem:[#allocation54_spill]]  ;;  %s836_s27 = int_to_ptr.hbm [resolvable:$true] %s835_s27 }
  0x4c   : > { %3975 = dma.hbm_to_vmem [thread:$0]  (%p4948_p5), %s836_s27, 16, %s838_s28, %s5434_s24  }
  0x4d   : > { %s869_s25 = scalar_lea.vmem [#allocation14], %s4991_s17  ;;  %s5433_s22 = scalar_lea.sflag [#allocation15], %s4988_s26 }
  0x4e   : > { %s876_s15 = sshll.u32 %s869_s25, 4  ;;  %s5475_s14 = sld [smem:[#allocation56_spill]]  ;;  %s877_s15 = int_to_ptr.vmem [resolvable:$true] %s876_s15 }
  0x4f   : > { %s903_s9 = scalar_lea.vmem [#allocation17], %s4991_s17  ;;  %s5435_s25 = scalar_lea.sflag [#allocation18], %s4988_s26 }
  0x50   : > { %s910_s5 = sshll.u32 %s903_s9, 4  ;;  %s5476_s18 = sld [smem:[#allocation60_spill]]  ;;  %s911_s5 = int_to_ptr.vmem [resolvable:$true] %s910_s5 }
  0x51   : > { %s872_s7 = scalar_lea.hbm %s5474_s12, %s4761_s1  ;;  %s5478_s8 = sld [smem:[#allocation50_spill]] }
  0x52   : > { %s874_s23 = sshll.u32 %s872_s7, 4  ;;  %s3844_s9 = sshll.u32 %s4991_s17, 4  ;;  %s875_s23 = int_to_ptr.hbm [resolvable:$true] %s874_s23 }
  0x53   : > { %3977 = dma.hbm_to_vmem [thread:$0]  (%p4948_p5), %s875_s23, 16, %s877_s15, %s5433_s22  }
  0x54   : > { %s906_s27 = scalar_lea.hbm %s5475_s14, %s4761_s1  ;;  %s953_s22 = scalar_lea.vmem [#allocation20], %s4991_s17 }
  0x55   : > { %s908_s7 = sshll.u32 %s906_s27, 4  ;;  %s960_s24 = sshll.u32 %s953_s22, 4  ;;  %s909_s7 = int_to_ptr.hbm [resolvable:$true] %s908_s7  ;;  %s961_s24 = int_to_ptr.vmem [resolvable:$true] %s960_s24 }
  0x56   : > { %3979 = dma.hbm_to_vmem [thread:$0]  (%p4948_p5), %s909_s7, 16, %s911_s5, %s5435_s25  }
  0x57   : > { %s956_s6 = scalar_lea.hbm %s5476_s18, %s4761_s1  ;;  %s951_s27 = scalar_lea.sflag [#allocation21], %s4988_s26 }
  0x58   : > { %s958_s28 = sshll.u32 %s956_s6, 4  ;;  %s5477_s7 = sld [smem:[#allocation48_spill]]  ;;  %s959_s28 = int_to_ptr.hbm [resolvable:$true] %s958_s28 }
  0x59   : > { %3981 = dma.hbm_to_vmem [thread:$0]  (%p4948_p5), %s959_s28, 16, %s961_s24, %s951_s27  }
  0x5a   : > { %s771_s25 = scalar_lea.vmem [#allocation7], %s4991_s17  ;;  %s808_s12 = scalar_lea.hbm %s5478_s8, %s4761_s1 }
  0x5b   : > { %s778_s6 = sshll.u32 %s771_s25, 4  ;;  %s810_s14 = sshll.u32 %s808_s12, 4  ;;  %s779_s6 = int_to_ptr.vmem [resolvable:$true] %s778_s6  ;;  %s811_s14 = int_to_ptr.hbm [resolvable:$true] %s810_s14 }
  0x5c   : > { %s805_s24 = scalar_lea.vmem [#allocation10], %s4991_s17  ;;  %s5479_s25 = scalar_lea.sflag [#allocation9], %s4988_s26 }
  0x5d   : > { %s812_s28 = sshll.u32 %s805_s24, 4  ;;  %s3947_s5 = sshll.u32 %s4761_s1, 4  ;;  %s813_s28 = int_to_ptr.vmem [resolvable:$true] %s812_s28 }
  0x5e   : > { %s774_s15 = scalar_lea.hbm %s5477_s7, %s4761_s1  ;;  %s5480_s11 = sld [smem:[#allocation53_spill]] }
  0x5f   : > { %s776_s23 = sshll.u32 %s774_s15, 4  ;;  %s848_s15 = scalar_lea.vmem [#allocation13], %s3844_s9  ;;  %s777_s23 = int_to_ptr.hbm [resolvable:$true] %s776_s23 }
  0x60   : > { %3972 = dma.hbm_to_vmem [thread:$0]  (%p4948_p5), %s777_s23, 16, %s779_s6, %s744_s0  }
  0x61   : > { %3974 = dma.hbm_to_vmem [thread:$0]  (%p4948_p5), %s811_s14, 16, %s813_s28, %s5479_s25  }
  0x62   : > { %s856_s23 = sshll.u32 %s848_s15, 4  ;;  %s4773_s6 = smov 64   ;;  %s857_s23 = int_to_ptr.vmem [resolvable:$true] %s856_s23 }
  0x63   : > { %s4774_s22 = smov 4   ;;  %s5481_s14 = scalar_lea.sflag [#allocation12], %s4988_s26 }
  0x64   : > { %s853_s10 = scalar_lea.hbm %s5480_s11, %s3947_s5  ;;  %s5482_s13 = sld [smem:[#allocation55_spill]] }
  0x65   : > { %s854_s12 = sshll.u32 %s853_s10, 4  ;;  %s886_s7 = scalar_lea.vmem [#allocation16], %s4991_s17  ;;  %s855_s12 = int_to_ptr.hbm [resolvable:$true] %s854_s12 }
  0x66   : > { %3976 = dma.hbm_to_vmem [thread:$0]  (%p4948_p5), %s855_s12, 256, %s857_s23, %s5481_s14, %s4773_s6, %s4773_s6, %s4774_s22  }
  0x67   : > { %s893_s9 = sshll.u32 %s886_s7, 4  ;;  %s5483_s0 = scalar_lea.sflag [#allocation15], %s4988_s26  ;;  %s894_s9 = int_to_ptr.vmem [resolvable:$true] %s893_s9 }
  0x68   : > { %s5484_s16 = sld [smem:[#allocation58_spill]]  ;;  %s928_s6 = scalar_lea.vmem [#allocation19], %s4991_s17 }
  0x69   : > { %s935_s22 = sshll.u32 %s928_s6, 4  ;;  %s5485_s14 = scalar_lea.sflag [#allocation18], %s4988_s26  ;;  %s936_s22 = int_to_ptr.vmem [resolvable:$true] %s935_s22 }
  0x6a   : > { %s889_s25 = scalar_lea.hbm %s5482_s13, %s4761_s1  ;;  %s970_s7 = scalar_lea.vmem [#allocation22], %s4991_s17 }
  0x6b   : > { %s891_s5 = sshll.u32 %s889_s25, 4  ;;  %s973_s25 = scalar_lea.hbm %s5421_s19, %s4761_s1  ;;  %s892_s5 = int_to_ptr.hbm [resolvable:$true] %s891_s5 }
  0x6c   : > { %3978 = dma.hbm_to_vmem [thread:$0]  (%p4948_p5), %s892_s5, 16, %s894_s9, %s5483_s0  }
  0x6d   : > { %s975_s5 = sshll.u32 %s973_s25, 4  ;;  %s977_s9 = sshll.u32 %s970_s7, 4  ;;  %s976_s5 = int_to_ptr.hbm [resolvable:$true] %s975_s5  ;;  %s978_s9 = int_to_ptr.vmem [resolvable:$true] %s977_s9 }
  0x6e   : > { %s931_s12 = scalar_lea.hbm %s5484_s16, %s4761_s1  ;;  %s990_s15 = scalar_lea.hbm %s5422_s20, %s4761_s1 }
  0x6f   : > { %s933_s23 = sshll.u32 %s931_s12, 4  ;;  %s987_s12 = scalar_lea.vmem [#allocation23], %s4991_s17  ;;  %s934_s23 = int_to_ptr.hbm [resolvable:$true] %s933_s23 }
  0x70   : > { %3980 = dma.hbm_to_vmem [thread:$0]  (%p4948_p5), %s934_s23, 16, %s936_s22, %s5485_s14  }
  0x71   : > { %3982 = dma.hbm_to_vmem [thread:$0]  (%p4948_p5), %s976_s5, 16, %s978_s9, %s951_s27  }
  0x72   : > { %s994_s6 = sshll.u32 %s987_s12, 4  ;;  %s992_s8 = sshll.u32 %s990_s15, 4  ;;  %s995_s6 = int_to_ptr.vmem [resolvable:$true] %s994_s6  ;;  %s993_s8 = int_to_ptr.hbm [resolvable:$true] %s992_s8 }
  0x73   : > { %s985_s23 = scalar_lea.sflag [#allocation24], %s4988_s26 }
  0x74   : > { %3983 = dma.hbm_to_vmem [thread:$0]  (%p4948_p5), %s993_s8, 16, %s995_s6, %s985_s23  }
  0x75 PF: > { %1003 = sbr.rel (%p4972_p11) target bundleno = 5160 (0x1428), region = 112 }
  0x7a   : > { %4704 = dma.done.wait (%p4960_p7), [#allocation4], 128  }
  0x7b   : > { %4706 = vsyncadd (%p4960_p7), [#allocation4], 4294967168  ;;  %s5486_s27 = sadd.s32 4294967295, %s4769_s2   ;;  %s5126_s26 = sand.u32 1, %s4745_s30  }
  0x7c   : > { %s5123_s17 = sand.u32 1, %s5486_s27  }
  0x7d   : > { %s1011_s8 = scalar_lea.sflag [#allocation6], %s5123_s17 }
  0x7e   : > { %4708 = dma.done.wait (%p4968_p10), %s1011_s8, 32  }
  0x7f   : > { %4710 = vsyncadd (%p4968_p10), %s1011_s8, 4294967264  ;;  %s1029_s22 = scalar_lea.sflag [#allocation9], %s5123_s17 }
  0x80   : > { %4712 = dma.done.wait (%p4968_p10), %s1029_s22, 32  }
  0x81   : > { %4714 = vsyncadd (%p4968_p10), %s1029_s22, 4294967264  ;;  %s1047_s28 = scalar_lea.sflag [#allocation12], %s5123_s17 }
  0x82   : > { %4716 = dma.done.wait (%p4968_p10), %s1047_s28, 272  }
  0x83   : > { %4718 = vsyncadd (%p4968_p10), %s1047_s28, 4294967024  ;;  %s3849_s5 = sshll.u32 %s5126_s26, 4  ;;  %s1066_s9 = scalar_lea.sflag [#allocation15], %s5123_s17 }
  0x84   : > { %s5149_s7 = scalar_lea.vmem [#allocation13], %s3849_s5 }
  0x85   : > { %4720 = dma.done.wait (%p4968_p10), %s1066_s9, 32  }
  0x86   : > { %4722 = vsyncadd (%p4968_p10), %s1066_s9, 4294967264  ;;  %s1084_s15 = scalar_lea.sflag [#allocation18], %s5123_s17 }
  0x87   : > { %4724 = dma.done.wait (%p4968_p10), %s1084_s15, 32  }
  0x88   : > { %4726 = vsyncadd (%p4968_p10), %s1084_s15, 4294967264  ;;  %s1102_s23 = scalar_lea.sflag [#allocation21], %s5123_s17 }
  0x89   : > { %4728 = dma.done.wait (%p4968_p10), %s1102_s23, 32  }
  0x8a   : > { %4730 = vsyncadd (%p4968_p10), %s1102_s23, 4294967264  ;;  %s1120_s22 = scalar_lea.sflag [#allocation24], %s5123_s17 }
  0x8b   : > { %4732 = dma.done.wait (%p4968_p10), %s1120_s22, 16  }
  0x8c   : > { %4734 = vsyncadd (%p4968_p10), %s1120_s22, 4294967280 }
  0x8d   : > { %4736 = dma.done.wait (%p4960_p7), [#allocation24], 16  }
  0x8e   : > { %4738 = vsyncadd (%p4960_p7), [#allocation24], 4294967280  ;;  %s5487_s5 = sld [smem:[#allocation37_spill]]  ;;  %v5196_v0 = vld [vmem:[#allocation3] sm:$0xff] }
  0x8f   : > { %s5488_s9 = sld [smem:[#allocation36_spill]] }
  0x90   : > { %s5489_s22 = sld [smem:[#allocation42_spill]] }
  0x91   : > { %s5491_s14 = sld [smem:[#allocation45_spill]] }
  0x92   : > { %s5492_s3 = sld [smem:[#allocation47_spill]] }
  0x93   : > { %s5494_s21 = sld [smem:[#allocation57_spill]] }
  0x94   : > { %p1271_p1 = scmp.lt.s32.totalorder %s5487_s5, 1  ;;  %s5495_s18 = sld [smem:[#allocation59_spill]] }
  0x95   : > { %p1279_p2 = scmp.lt.s32.totalorder %s5488_s9, 1  ;;  %s5496_s4 = sld [smem:[#allocation63_spill]] }
  0x96   : > { %s5530_s5 = smov (!%p1271_p1, %s5487_s5), 1  ;;  %p3864_p3 = scmp.ne.s32.totalorder %s5488_s9, 0 }
  0x97   : > { %s1280_s17 = scalar_select %p1279_p2, %s5488_s9, 1 }
  0x98   : > { %s5186_s15 = sshll.u32 %s5530_s5, 3 }
  0x99   : > { %s1274_s28 = scalar_lea.vmem %s5489_s22, %s5186_s15  ;;  %s3948_s12 = sshll.u32 %s1280_s17, 4 }
  0x9a   : > { %s3952_s10 = sshll.u32 %s1280_s17, 5  ;;  %s1283_s5 = scalar_lea.vmem %s5491_s14, %s3948_s12 }
  0x9b   : > { %s5204_s11 = scalar_lea.vmem %s5492_s3, %s3948_s12  ;;  %s5493_s22 = sld [smem:[#allocation51_spill]] }
  0x9c   : > { %s5214_s17 = scalar_lea.vmem %s5494_s21, %s3948_s12  ;;  %s5219_s24 = scalar_lea.vmem %s5495_s18, %s3952_s10 }
  0x9d   : > { %s1307_s3 = scalar_lea.vmem %s5496_s4, %s5186_s15  ;;  %1313 = sbr.rel (%p3864_p3) target bundleno = 164 (0xa4), region = 176 }
  0xa1   : > { %s5209_s13 = scalar_lea.vmem %s5493_s22, %s3948_s12 }
  0xa2   : > { %v1314_v1 = vld [vmem:[%s1274_s28] sm:$0xff]  ;;  %vm1315_vm0 = vcmask 261120  }
  0xa3   : > { %1316 = vst.msk [vmem:[#allocation2] sm:$0xff] %vm1315_vm0, %v1314_v1 }
  0xa4 PF: > { %v3954_v2 = vld [vmem:[%s1283_s5 + $0x8] sm:$0xff]  ;;  %v3953_v3 = vld [vmem:[%s1283_s5] sm:$0xff]  ;;  %vm1346_vm1 = vcmask 261120   ;;  %s5497_s16 = scalar_lea.vmem [#allocation5], %s5126_s26  ;;  %s4775_s18 = smov 96   ;;  %vm1862_vm2 = vcmask 64512  }
  0xa5   : > { %1356 = vmatpush.bf16.msra.mxu0 %v3954_v2  ;;  %v4191_v6 = vld [vmem:[%s5497_s16] ss:$0 sm:$0xff]  ;;  %s4776_s25 = smov 64   ;;  %vm1990_vm3 = vcmask 1043456   ;;  %s5498_s10 = scalar_lea.vmem [#allocation7], %s5126_s26  ;;  %vm3359_vm11 = vcmask 523264  }
  0xa6   : > { %s5501_s28 = sld [smem:[#allocation43_spill]]  ;;  %s5503_s5 = scalar_lea.vmem [#allocation10], %s5126_s26 }
  0xa7   : > { %s5504_s23 = scalar_lea.vmem [#allocation14], %s5126_s26  ;;  %s5506_s29 = scalar_lea.vmem [#allocation17], %s5126_s26 }
  0xa8   : > { %s5507_s22 = scalar_lea.vmem [#allocation19], %s5126_s26  ;;  %s5508_s8 = scalar_lea.vmem [#allocation20], %s5126_s26 }
  0xa9   : > { %1357 = vmatpush.bf16.msra.mxu0 %v3953_v3  ;;  %s5509_s27 = scalar_lea.vmem [#allocation22], %s5126_s26  ;;  %s5510_s21 = scalar_lea.vmem [#allocation23], %s5126_s26 }
  0xaa   : > { %v5226_v4 = vld [vmem:[#allocation2] sm:$0xff] }
  0xab   : > { %v1330_v5 = vpack.c.bf16 %v5226_v4, %v5226_v4 }
  0xac   : > { %s5502_s9 = scalar_lea.vmem %s5501_s28, %s5186_s15 }
  0xad   : > { %3873 = vmatmul.msk.bf16.vlgmr.msra.gmra.mxu0 %vm1346_vm1, %v1330_v5 }
 0x12a   : > { %v1359_v7 = vpop.f32.mrf.mxu0 }
 0x12b   : > { %v5233_v8 = vadd.f32 %v4191_v6, %v1359_v7 }
 0x12d   : > { %1528 = vrot.lane.b32.xlu0 %v5233_v8, %s4775_s18 }
 0x132   : > { %v1361_v9 = vpop.f32.mrf.mxu0 }
 0x19f   : > { %v1529_v10 = vpop.permute.xlu0 %1528 }
 0x1a0   : > { %v4084_v11 = vpack.i.bf16 %v5233_v8, %v1529_v10 }
 0x1a2   : > { %4085 = vxpose.xlu0.b32.start.end [1/1] (short) (narrow) %v4084_v11, 32 }
 0x246   : > { %v4086_v12 = vpop.trf.xlu0 }
 0x247   : > { %v4087_v15 = vunpack.i.l.bf16 %v4086_v12  ;;  %v4090_v23 = vunpack.i.h.bf16 %v4086_v12 }
 0x24e   : > { %v4091_v13 = vpop.trf.xlu0 }
 0x24f   : > { %v4095_v14 = vunpack.i.h.bf16 %v4091_v13  ;;  %v4092_v18 = vunpack.i.l.bf16 %v4091_v13 }
 0x251   : > { %v4106_v16 = vpack.i.bf16 %v4087_v15, %v4095_v14 }
 0x253   : > { %4107 = vxpose.xlu1.b32.start.end [1/1] (short) (narrow) %v4106_v16, 8 }
 0x256   : > { %v4096_v17 = vpop.trf.xlu0 }
 0x257   : > { %v4100_v19 = vunpack.i.h.bf16 %v4096_v17  ;;  %v4097_v20 = vunpack.i.l.bf16 %v4096_v17 }
 0x259   : > { %1459 = vxpose.xlu2.b32.start.end [1/1] (short) (narrow) %v4100_v19, 8  ;;  %v4113_v21 = vpack.i.bf16 %v4097_v20, %v4092_v18 }
 0x25b   : > { %4114 = vxpose.xlu1.b32.start.end [1/1] (short) (narrow) %v4113_v21, 8 }
 0x25e   : > { %v4101_v22 = vpop.trf.xlu0 }
 0x25f   : > { %v4102_v24 = vunpack.i.l.bf16 %v4101_v22  ;;  %v4105_v25 = vunpack.i.h.bf16 %v4101_v22 }
 0x261   : > { %v4120_v26 = vpack.i.bf16 %v4102_v24, %v4090_v23 }
 0x263   : > { %4121 = vxpose.xlu2.b32.start.end [1/1] (short) (narrow) %v4120_v26, 8  ;;  %1491 = vxpose.xlu1.b32.start.end [1/1] (short) (narrow) %v4105_v25, 8 }
 0x2f2   : > { %v1475_v27 = vpop.trf.xlu2 }
 0x2f3   : > { %v1525_v48 = vpack.c.bf16 %v1475_v27, %v1475_v27 }
 0x2f7   : > { %v4108_v28 = vpop.trf.xlu1 }
 0x2f8   : > { %v4112_v29 = vunpack.i.h.bf16 %v4108_v28  ;;  %v4109_v45 = vunpack.i.l.bf16 %v4108_v28 }
 0x2fa   : > { %v1691_v30 = vpack.c.bf16 %v4112_v29, %v4112_v29  ;;  %v1524_v49 = vpack.c.bf16 %v4109_v45, %v4109_v45 }
 0x2fc   : > { %v1867_v31 = vsel %vm1862_vm2, %v1691_v30, 0  ;;  %v4122_v32 = vpop.trf.xlu2 }
 0x2fd   : > { %1876 = vmatpush.bf16.xpose.msra.mxu1 %v1867_v31  ;;  %v4123_v33 = vunpack.i.l.bf16 %v4122_v32  ;;  %v4126_v34 = vunpack.i.h.bf16 %v4122_v32 }
 0x2ff   : > { %v4115_v35 = vpop.trf.xlu1  ;;  %v1523_v36 = vpack.c.bf16 %v4123_v33, %v4123_v33  ;;  %v1694_v37 = vpack.c.bf16 %v4126_v34, %v4126_v34 }
 0x300   : > { %v4116_v38 = vunpack.i.l.bf16 %v4115_v35  ;;  %v4119_v39 = vunpack.i.h.bf16 %v4115_v35 }
 0x301   : > { %v1924_v40 = vsel %vm1862_vm2, %v1694_v37, 0 }
 0x302   : > { %v1692_v41 = vpack.c.bf16 %v4116_v38, %v4116_v38  ;;  %v1693_v42 = vpack.c.bf16 %v4119_v39, %v4119_v39  ;;  %1933 = vmatpush.bf16.xpose.msrb.mxu0 %v1924_v40 }
 0x304   : > { %3874 = vmatmul.msk.bf16.vlgmr.msra.gmra.mxu1 %vm1862_vm2, %v1523_v36  ;;  %v1886_v43 = vsel %vm1862_vm2, %v1692_v41, 0  ;;  %v1905_v44 = vsel %vm1862_vm2, %v1693_v42, 0 }
 0x305   : > { %1895 = vmatpush.bf16.xpose.msra.mxu2 %v1886_v43  ;;  %1914 = vmatpush.bf16.xpose.msra.mxu3 %v1905_v44 }
 0x307   : > { %v1507_v46 = vpop.trf.xlu1 }
 0x308   : > { %v1526_v47 = vpack.c.bf16 %v1507_v46, %v1507_v46 }
 0x30a   : > { %3877 = vmatmul.msk.bf16.vlgmr.msrb.gmra.mxu0 %vm1862_vm2, %v1526_v47 }
 0x30c   : > { %3875 = vmatmul.msk.bf16.vlgmr.msra.gmra.mxu2 %vm1862_vm2, %v1524_v49  ;;  %3876 = vmatmul.msk.bf16.vlgmr.msra.gmra.mxu3 %vm1862_vm2, %v1525_v48 }
 0x381   : > { %v1878_v50 = vpop.f32.mrf.mxu1 }
 0x382   : > { %v1879_v51 = vadd.f32 %v1878_v50, %v5196_v0 }
 0x384   : > { %v1939_v52 = vsel %vm1862_vm2, %v1879_v51, -inf }
 0x385   : > { %1940 = vmax.xlane.f32.xlu1 %v1939_v52 }
 0x387   : > { %v1935_v53 = vpop.f32.mrf.mxu0 }
 0x388   : > { %v1936_v1 = vadd.f32 %v1935_v53, %v5196_v0 }
 0x389   : > { %v1880_v54 = vpop.f32.mrf.mxu1 }
 0x38a   : > { %v1948_v2 = vsel %vm1862_vm2, %v1936_v1, -inf }
 0x38f   : > { %v1897_v55 = vpop.f32.mrf.mxu2  ;;  %v1916_v56 = vpop.f32.mrf.mxu3 }
 0x390   : > { %v1898_v57 = vadd.f32 %v1897_v55, %v5196_v0  ;;  %v1917_v58 = vadd.f32 %v1916_v56, %v5196_v0  ;;  %v1937_v59 = vpop.f32.mrf.mxu0 }
 0x392   : > { %v1945_v60 = vsel %vm1862_vm2, %v1917_v58, -inf  ;;  %v1942_v61 = vsel %vm1862_vm2, %v1898_v57, -inf }
 0x393   : > { %1946 = vmax.xlane.f32.xlu0 %v1945_v60  ;;  %1943 = vmax.xlane.f32.xlu2 %v1942_v61 }
 0x397   : > { %v1899_v62 = vpop.f32.mrf.mxu2  ;;  %v1918_v63 = vpop.f32.mrf.mxu3 }
 0x39e   : > { %1695 = vrot.lane.b32.xlu1 %v5233_v8, %s4776_s25 }
 0x3c8   : > { %1949 = vmax.xlane.f32.xlu1 %v1948_v2 }
 0x3f8   : > { %v1941_v3 = vpop.xlane.xlu1 %1940 }
 0x3f9   : > { %v1951_v12 = vsub.f32 %v1879_v51, %v1941_v3 }
 0x3fb   : > { %v1955_v13 = vmul.f32 1.442695, %v1951_v12 }
 0x3fd   : > { %4203 = vpow2.f32 %v1955_v13  ;;  %v4192_v13 = vld [vmem:[%s5498_s10] ss:$0 sm:$0xff] }
 0x403   : > { %v4204_v16 = vpop.eup %4203 }
 0x404   : > { %v1963_v18 = vsel %vm1862_vm2, %v4204_v16, 0.0 }
 0x406   : > { %v1944_v14 = vpop.xlane.xlu2 %1943  ;;  %v1947_v0 = vpop.xlane.xlu0 %1946 }
 0x407   : > { %v1952_v8 = vsub.f32 %v1898_v57, %v1944_v14  ;;  %v1953_v17 = vsub.f32 %v1917_v58, %v1947_v0 }
 0x409   : > { %v1957_v15 = vmul.f32 1.442695, %v1952_v8  ;;  %v1959_v19 = vmul.f32 1.442695, %v1953_v17  ;;  %v4777_v17 = vmov 32.0  }
 0x40b   : > { %4205 = vpow2.f32 %v1957_v15 }
 0x40c   : > { %4207 = vpow2.f32 %v1959_v19 }
 0x410   : > { %v1696_v5 = vpop.permute.xlu1 %1695 }
 0x411   : > { %1698 = vxpose.xlu1.b32.start.end [1/1] (short) (narrow) %v1696_v5, 32  ;;  %v4206_v20 = vpop.eup %4205 }
 0x412   : > { %v1966_v22 = vsel %vm1862_vm2, %v4206_v20, 0.0  ;;  %v4208_v24 = vpop.eup %4207 }
 0x413   : > { %v1969_v25 = vsel %vm1862_vm2, %v4208_v24, 0.0 }
 0x43b   : > { %v1950_v6 = vpop.xlane.xlu1 %1949 }
 0x43c   : > { %v1954_v21 = vsub.f32 %v1936_v1, %v1950_v6 }
 0x43e   : > { %v1961_v23 = vmul.f32 1.442695, %v1954_v21 }
 0x440   : > { %4209 = vpow2.f32 %v1961_v23 }
 0x446   : > { %v4210_v26 = vpop.eup %4209 }
 0x447   : > { %v1972_v27 = vsel %vm1862_vm2, %v4210_v26, 0.0 }
 0x4b5   : > { %v1714_v7 = vpop.trf.xlu1 }
 0x4bd   : > { %v1715_v9 = vpop.trf.xlu1 }
 0x4be   : > { %v4127_v10 = vpack.i.bf16 %v1714_v7, %v1715_v9  ;;  %v3956_v7 = vld [vmem:[%s5204_s11 + $0x8] sm:$0xff]  ;;  %v3955_v9 = vld [vmem:[%s5204_s11] sm:$0xff]  ;;  %s5499_s11 = scalar_lea.vmem [#allocation11], %s5126_s26 }
 0x4c0   : > { %4128 = vxpose.xlu2.b32.start.end [1/1] (short) (narrow) %v4127_v10, 8 }
 0x4c5   : > { %v1716_v11 = vpop.trf.xlu1 }
 0x4c6   : > { %1794 = vxpose.xlu0.b32.start.end [1/1] (short) (narrow) %v1716_v11, 8 }
 0x4cd   : > { %v1717_v29 = vpop.trf.xlu1 }
 0x531   : > { %1964 = vadd.xlane.f32.xlu2 %v1963_v18 }
 0x539   : > { %1967 = vadd.xlane.f32.xlu2 %v1966_v22 }
 0x541   : > { %1970 = vadd.xlane.f32.xlu2 %v1969_v25 }
 0x549   : > { %1973 = vadd.xlane.f32.xlu2 %v1972_v27 }
 0x559   : > { %v4129_v28 = vpop.trf.xlu2 }
 0x55a   : > { %v4133_v30 = vunpack.i.h.bf16 %v4129_v28  ;;  %v4130_v33 = vunpack.i.l.bf16 %v4129_v28  ;;  %v3957_v28 = vld [vmem:[%s5209_s13] sm:$0xff] }
 0x55c   : > { %v1858_v31 = vpack.c.bf16 %v4133_v30, %v4133_v30  ;;  %v1859_v34 = vpack.c.bf16 %v4130_v33, %v4130_v33 }
 0x55e   : > { %v1992_v32 = vsel %vm1990_vm3, %v1858_v31, 0  ;;  %v2011_v35 = vsel %vm1990_vm3, %v1859_v34, 0  ;;  %v4195_v31 = vld [vmem:[%s5499_s11] ss:$0 sm:$0xff] }
 0x55f   : > { %2001 = vmatpush.bf16.msrb.mxu1 %v1992_v32  ;;  %2020 = vmatpush.bf16.msrb.mxu2 %v2011_v35 }
 0x563   : > { %2249 = vmatpush.bf16.msra.mxu1 %v3956_v7 }
 0x567   : > { %2250 = vmatpush.bf16.msra.mxu1 %v3955_v9 }
 0x56a   : > { %v1810_v36 = vpop.trf.xlu0 }
 0x56b   : > { %v1860_v37 = vpack.c.bf16 %v1810_v36, %v1810_v36 }
 0x56d   : > { %v2030_v38 = vsel %vm1990_vm3, %v1860_v37, 0 }
 0x56e   : > { %2039 = vmatpush.bf16.msrb.mxu3 %v2030_v38 }
 0x572   : > { %1826 = vxpose.xlu2.b32.start.end [1/1] (short) (narrow) %v1717_v29, 8 }
 0x5a4   : > { %v1965_v39 = vpop.xlane.xlu2 %1964 }
 0x5a5   : > { %4211 = vrcp.f32 %v1965_v39 }
 0x5ab   : > { %v4212_v40 = vpop.eup %4211 }
 0x5ac   : > { %v1979_v41 = vmul.f32 %v4212_v40, %v4204_v16  ;;  %v1968_v42 = vpop.xlane.xlu2 %1967 }
 0x5ad   : > { %4213 = vrcp.f32 %v1968_v42  ;;  %v2294_v42 = vld [vmem:[%s5502_s9] sm:$0xff] }
 0x5ae   : > { %v1983_v43 = vpack.c.bf16 %v1979_v41, %v1979_v41 }
 0x5b0   : > { %3878 = vmatmul.msk.bf16.vlgmr.msrb.gmra.mxu1 %vm1862_vm2, %v1983_v43 }
 0x5b3   : > { %v4214_v44 = vpop.eup %4213 }
 0x5b4   : > { %v1980_v45 = vmul.f32 %v4214_v44, %v4206_v20  ;;  %v1971_v46 = vpop.xlane.xlu2 %1970  ;;  %v4194_v44 = vld [vmem:[%s5503_s5] ss:$0 sm:$0xff] }
 0x5b5   : > { %4215 = vrcp.f32 %v1971_v46 }
 0x5b6   : > { %v1984_v47 = vpack.c.bf16 %v1980_v45, %v1980_v45 }
 0x5b8   : > { %3879 = vmatmul.msk.bf16.vlgmr.msrb.gmra.mxu2 %vm1862_vm2, %v1984_v47  ;;  %v2308_v47 = vpack.c.bf16 %v2294_v42, %v2294_v42 }
 0x5bb   : > { %v4216_v48 = vpop.eup %4215 }
 0x5bc   : > { %v1981_v49 = vmul.f32 %v4216_v48, %v4208_v24  ;;  %v1974_v51 = vpop.xlane.xlu2 %1973 }
 0x5bd   : > { %4217 = vrcp.f32 %v1974_v51 }
 0x5be   : > { %v1985_v50 = vpack.c.bf16 %v1981_v49, %v1981_v49  ;;  %4219 = vrcp.f32 %v4777_v17 }
 0x5c0   : > { %3880 = vmatmul.msk.bf16.vlgmr.msrb.gmra.mxu3 %vm1862_vm2, %v1985_v50 }
 0x5c3   : > { %v4218_v52 = vpop.eup %4217 }
 0x5c4   : > { %v1982_v54 = vmul.f32 %v4218_v52, %v4210_v26  ;;  %v4220_v18 = vpop.eup %4219 }
 0x5c5   : > { %v2261_v19 = vmul.f32 32.0, %v4220_v18  ;;  %vm2265_vm4 = vweird.f32 %v4220_v18 }
 0x5c6   : > { %v1986_v57 = vpack.c.bf16 %v1982_v54, %v1982_v54 }
 0x5c7   : > { %v2262_v20 = vsub.f32 1.0, %v2261_v19 }
 0x5c9   : > { %v2263_v21 = vmul.f32 %v4220_v18, %v2262_v20 }
 0x5cb   : > { %v2264_v22 = vadd.f32 %v4220_v18, %v2263_v21 }
 0x5cd   : > { %v5274_v23 = vsel %vm2265_vm4, %v4220_v18, %v2264_v22 }
 0x60b   : > { %v1842_v53 = vpop.trf.xlu2 }
 0x60c   : > { %v1861_v55 = vpack.c.bf16 %v1842_v53, %v1842_v53 }
 0x60e   : > { %v2049_v56 = vsel %vm1990_vm3, %v1861_v55, 0 }
 0x60f   : > { %2058 = vmatpush.bf16.msra.mxu0 %v2049_v56 }
 0x612   : > { %3881 = vmatmul.msk.bf16.vlgmr.msra.gmra.mxu0 %vm1862_vm2, %v1986_v57 }
 0x62d   : > { %v2003_v58 = vpop.f32.mrf.mxu1 }
 0x62e   : > { %2064 = vxpose.xlu1.b32.start.end [1/1] (short) (narrow) %v2003_v58, 8 }
 0x635   : > { %v2005_v59 = vpop.f32.mrf.mxu1 }
 0x63b   : > { %v2022_v60 = vpop.f32.mrf.mxu2 }
 0x63c   : > { %2096 = vxpose.xlu2.b32.start.end [1/1] (short) (narrow) %v2022_v60, 8 }
 0x643   : > { %v2024_v61 = vpop.f32.mrf.mxu2  ;;  %v2041_v62 = vpop.f32.mrf.mxu3 }
 0x644   : > { %2128 = vxpose.xlu2.b32.start.end [1/1] (short) (narrow) %v2041_v62, 8 }
 0x64b   : > { %v2043_v63 = vpop.f32.mrf.mxu3 }
 0x68f   : > { %v2060_v1 = vpop.f32.mrf.mxu0 }
 0x690   : > { %2160 = vxpose.xlu0.b32.start.end [1/1] (short) (narrow) %v2060_v1, 8 }
 0x697   : > { %v2062_v2 = vpop.f32.mrf.mxu0 }
 0x6d2   : > { %v2080_v3 = vpop.trf.xlu1 }
 0x6d3   : > { %2192 = vxpose.xlu2.b32.start [1/4] (short) (narrow) %v2080_v3, 8 }
 0x6d5   : > { %v2112_v5 = vpop.trf.xlu2 }
 0x6db   : > { %2193 = vxpose.xlu2.b32.cont [2/4] (short) (narrow) %v2112_v5, 8 }
 0x6dd   : > { %v2144_v6 = vpop.trf.xlu2 }
 0x6e3   : > { %2194 = vxpose.xlu2.b32.cont [3/4] (short) (narrow) %v2144_v6, 8 }
 0x734   : > { %v2176_v10 = vpop.trf.xlu0 }
 0x735   : > { %2195 = vxpose.xlu2.b32.end [4/4] (short) (narrow) %v2176_v10, 8 }
 0x7b6   : > { %v2208_v11 = vpop.trf.xlu2 }
 0x7b7   : > { %v2224_v12 = vpack.c.bf16 %v2208_v11, %v2208_v11 }
 0x7b9   : > { %3890 = vmatmul.msk.bf16.vlgmr.msra.gmra.mxu1 %vm1346_vm1, %v2224_v12 }
 0x836   : > { %v2252_v14 = vpop.f32.mrf.mxu1 }
 0x837   : > { %v2253_v8 = vadd.f32 %v4192_v13, %v2252_v14 }
 0x839   : > { %v2256_v15 = vadd.f32 %v2253_v8, %v5226_v4  ;;  %v3958_v4 = vld [vmem:[%s5209_s13 + $0x8] sm:$0xff]  ;;  %s5500_s13 = scalar_lea.vmem [#allocation8], %s5126_s26 }
 0x83a   : > { %2342 = vrot.lane.b32.xlu2 %v3958_v4, %s4775_s18  ;;  %2333 = vmatpush.bf16.msra.mxu2 %v3958_v4  ;;  %v4193_v41 = vld [vmem:[%s5500_s13] ss:$0 sm:$0xff] }
 0x83b   : > { %v2257_v0 = vsel %vm1346_vm1, %v2256_v15, 0.0 }
 0x83c   : > { %2258 = vadd.xlane.f32.xlu0 %v2257_v0 }
 0x83e   : > { %v2254_v16 = vpop.f32.mrf.mxu1  ;;  %2334 = vmatpush.bf16.msra.mxu2 %v3957_v28 }
 0x850   : > { %2346 = vrot.lane.b32.xlu0 %v4195_v31, %s4775_s18 }
 0x894   : > { %v2343_v30 = vpop.permute.xlu2 %2342 }
 0x895   : > { %2358 = vmatpush.bf16.msra.mxu3 %v2343_v30 }
 0x8af   : > { %v2259_v24 = vpop.xlane.xlu0 %2258 }
 0x8b0   : > { %v2267_v25 = vmul.f32 %v5274_v23, %v2259_v24 }
 0x8b2   : > { %v2268_v26 = vsub.f32 %v2256_v15, %v2267_v25 }
 0x8b4   : > { %v2269_v27 = vmul.f32 %v2268_v26, %v2268_v26 }
 0x8b6   : > { %v2270_v29 = vsel %vm1346_vm1, %v2269_v27, 0.0 }
 0x8b7   : > { %2271 = vadd.xlane.f32.xlu1 %v2270_v29 }
 0x8c2   : > { %v2347_v51 = vpop.permute.xlu0 %2346 }
 0x8d0   : > { %2340 = vrot.lane.b32.xlu1 %v3957_v28, %s4775_s18 }
 0x92a   : > { %v2272_v32 = vpop.xlane.xlu1 %2271 }
 0x92b   : > { %v2273_v33 = vmul.f32 %v2272_v32, %v5274_v23 }
 0x92d   : > { %v2274_v34 = vadd.f32 1e-05, %v2273_v33 }
 0x92f   : > { %4221 = vrsqrt.f32 %v2274_v34  ;;  %vm2281_vm6 = vweird.f32 %v2274_v34 }
 0x935   : > { %v4222_v35 = vpop.eup %4221 }
 0x936   : > { %v2276_v36 = vmul.f32 %v4222_v35, %v2274_v34  ;;  %vm2282_vm5 = vweird.f32 %v4222_v35 }
 0x937   : > { %vm2283_vm7 = vmor %vm2281_vm6, %vm2282_vm5 }
 0x938   : > { %v2277_v37 = vmul.f32 %v4222_v35, %v2276_v36 }
 0x93a   : > { %v2278_v38 = vmul.f32 0.5, %v2277_v37 }
 0x93c   : > { %v2279_v39 = vsub.f32 1.5, %v2278_v38 }
 0x93e   : > { %v2280_v40 = vmul.f32 %v4222_v35, %v2279_v39 }
 0x940   : > { %v2284_v43 = vsel %vm2283_vm7, %v4222_v35, %v2280_v40 }
 0x941   : > { %v2285_v45 = vmul.f32 %v2284_v43, %v2268_v26 }
 0x942   : > { %v2341_v46 = vpop.permute.xlu1 %2340 }
 0x943   : > { %v2289_v48 = vmul.f32 %v4193_v41, %v2285_v45  ;;  %2359 = vmatpush.bf16.msra.mxu3 %v2341_v46 }
 0x945   : > { %v5295_v49 = vadd.f32 %v4194_v44, %v2289_v48 }
 0x946   : > { %3900 = vmatmul.msk.bf16.vlgmr.msra.gmra.mxu3 %vm1346_vm1, %v2308_v47 }
 0x947   : > { %v2307_v50 = vpack.c.bf16 %v5295_v49, %v5295_v49 }
 0x949   : > { %3899 = vmatmul.msk.bf16.vlgmr.msra.gmra.mxu2 %vm1346_vm1, %v2307_v50 }
 0x9c9   : > { %v2361_v52 = vpop.f32.mrf.mxu3 }
 0x9ca   : > { %v5301_v53 = vadd.f32 %v2361_v52, %v2347_v51 }
 0x9cc   : > { %v2336_v54 = vpop.f32.mrf.mxu2 }
 0x9cd   : > { %v2337_v55 = vadd.f32 %v4195_v31, %v2336_v54 }
 0x9cf   : > { %v4134_v56 = vpack.i.bf16 %v2337_v55, %v5301_v53 }
 0x9d1   : > { %v2363_v57 = vpop.f32.mrf.mxu3  ;;  %4135 = vxpose.xlu1.b32.start.end [1/1] (short) (narrow) %v4134_v56, 32 }
 0x9d4   : > { %v2338_v58 = vpop.f32.mrf.mxu2 }
 0xa75   : > { %v4136_v59 = vpop.trf.xlu1 }
 0xa76   : > { %v4137_v62 = vunpack.i.l.bf16 %v4136_v59  ;;  %v4140_v7 = vunpack.i.h.bf16 %v4136_v59 }
 0xa7d   : > { %v4141_v60 = vpop.trf.xlu1 }
 0xa7e   : > { %v4142_v10 = vunpack.i.l.bf16 %v4141_v60  ;;  %v4145_v12 = vunpack.i.h.bf16 %v4141_v60 }
 0xa85   : > { %v4146_v61 = vpop.trf.xlu1 }
 0xa86   : > { %v4150_v63 = vunpack.i.h.bf16 %v4146_v61  ;;  %v4147_v3 = vunpack.i.l.bf16 %v4146_v61 }
 0xa88   : > { %v4163_v1 = vpack.i.bf16 %v4150_v63, %v4137_v62 }
 0xa8a   : > { %4164 = vxpose.xlu2.b32.start.end [1/1] (short) (narrow) %v4163_v1, 8 }
 0xa8d   : > { %v4151_v2 = vpop.trf.xlu1 }
 0xa8e   : > { %v4152_v5 = vunpack.i.l.bf16 %v4151_v2  ;;  %v4155_v9 = vunpack.i.h.bf16 %v4151_v2 }
 0xa90   : > { %v4156_v6 = vpack.i.bf16 %v4152_v5, %v4147_v3  ;;  %v4170_v11 = vpack.i.bf16 %v4155_v9, %v4142_v10 }
 0xa92   : > { %4157 = vxpose.xlu0.b32.start.end [1/1] (short) (narrow) %v4156_v6, 8  ;;  %2397 = vxpose.xlu2.b32.start.end [1/1] (short) (narrow) %v4140_v7, 8 }
 0xa9a   : > { %4171 = vxpose.xlu0.b32.start.end [1/1] (short) (narrow) %v4170_v11, 8 }
 0xaa2   : > { %2429 = vxpose.xlu0.b32.start.end [1/1] (short) (narrow) %v4145_v12, 8 }
 0xb23   : > { %v4165_v13 = vpop.trf.xlu2 }
 0xb24   : > { %v4166_v14 = vunpack.i.l.bf16 %v4165_v13  ;;  %v4169_v22 = vunpack.i.h.bf16 %v4165_v13 }
 0xb26   : > { %v2689_v8 = vpack.c.bf16 %v4166_v14, %v4166_v14  ;;  %v2527_v4 = vpack.c.bf16 %v4169_v22, %v4169_v22 }
 0xb28   : > { %v2865_v15 = vsel %vm1862_vm2, %v2689_v8, 0 }
 0xb29   : > { %2874 = vmatpush.bf16.xpose.msrb.mxu0 %v2865_v15 }
 0xb2b   : > { %v2413_v0 = vpop.trf.xlu2 }
 0xb2c   : > { %v2525_v16 = vpack.c.bf16 %v2413_v0, %v2413_v0 }
 0xb30   : > { %3901 = vmatmul.msk.bf16.vlgmr.msrb.gmra.mxu0 %vm1862_vm2, %v2525_v16 }
 0xb36   : > { %v4158_v17 = vpop.trf.xlu0 }
 0xb37   : > { %v4162_v18 = vunpack.i.h.bf16 %v4158_v17  ;;  %v4159_v19 = vunpack.i.l.bf16 %v4158_v17 }
 0xb39   : > { %v2691_v20 = vpack.c.bf16 %v4159_v19, %v4159_v19  ;;  %v2692_v21 = vpack.c.bf16 %v4162_v18, %v4162_v18 }
 0xb3b   : > { %v2903_v24 = vsel %vm1862_vm2, %v2691_v20, 0  ;;  %v2922_v25 = vsel %vm1862_vm2, %v2692_v21, 0 }
 0xb3c   : > { %2912 = vmatpush.bf16.xpose.msrb.mxu2 %v2903_v24  ;;  %2931 = vmatpush.bf16.xpose.msrb.mxu3 %v2922_v25 }
 0xb3e   : > { %v4172_v26 = vpop.trf.xlu0 }
 0xb3f   : > { %v4176_v27 = vunpack.i.h.bf16 %v4172_v26  ;;  %v4173_v28 = vunpack.i.l.bf16 %v4172_v26 }
 0xb41   : > { %v2528_v29 = vpack.c.bf16 %v4176_v27, %v4176_v27  ;;  %v2690_v30 = vpack.c.bf16 %v4173_v28, %v4173_v28 }
 0xb43   : > { %3903 = vmatmul.msk.bf16.vlgmr.msrb.gmra.mxu2 %vm1862_vm2, %v2527_v4  ;;  %v2884_v31 = vsel %vm1862_vm2, %v2690_v30, 0  ;;  %3904 = vmatmul.msk.bf16.vlgmr.msrb.gmra.mxu3 %vm1862_vm2, %v2528_v29 }
 0xb44   : > { %2893 = vmatpush.bf16.xpose.msrb.mxu1 %v2884_v31 }
 0xb46   : > { %v2445_v32 = vpop.trf.xlu0 }
 0xb47   : > { %v2526_v33 = vpack.c.bf16 %v2445_v32, %v2445_v32 }
 0xb4b   : > { %3902 = vmatmul.msk.bf16.vlgmr.msrb.gmra.mxu1 %vm1862_vm2, %v2526_v33 }
 0xbad   : > { %v2876_v34 = vpop.f32.mrf.mxu0 }
 0xbae   : > { %v2937_v35 = vsel %vm1862_vm2, %v2876_v34, -inf }
 0xbaf   : > { %2938 = vmax.xlane.f32.xlu2 %v2937_v35 }
 0xbb5   : > { %v2878_v36 = vpop.f32.mrf.mxu0 }
 0xbc6   : > { %v2914_v37 = vpop.f32.mrf.mxu2  ;;  %v2933_v38 = vpop.f32.mrf.mxu3 }
 0xbc7   : > { %v2943_v39 = vsel %vm1862_vm2, %v2914_v37, -inf  ;;  %v2946_v40 = vsel %vm1862_vm2, %v2933_v38, -inf }
 0xbc8   : > { %v2895_v41 = vpop.f32.mrf.mxu1  ;;  %2944 = vmax.xlane.f32.xlu0 %v2943_v39  ;;  %2947 = vmax.xlane.f32.xlu2 %v2946_v40 }
 0xbc9   : > { %v2940_v42 = vsel %vm1862_vm2, %v2895_v41, -inf }
 0xbca   : > { %2941 = vmax.xlane.f32.xlu1 %v2940_v42 }
 0xbce   : > { %v2916_v43 = vpop.f32.mrf.mxu2  ;;  %v2935_v44 = vpop.f32.mrf.mxu3 }
 0xbd0   : > { %v2897_v45 = vpop.f32.mrf.mxu1 }
 0xbdc   : > { %2694 = vrot.lane.b32.xlu0 %v5301_v53, %s4775_s18 }
 0xc22   : > { %v2939_v46 = vpop.xlane.xlu2 %2938 }
 0xc23   : > { %v2949_v47 = vsub.f32 %v2876_v34, %v2939_v46 }
 0xc25   : > { %v2953_v48 = vmul.f32 1.442695, %v2949_v47 }
 0xc27   : > { %4223 = vpow2.f32 %v2953_v48 }
 0xc2d   : > { %v4224_v50 = vpop.eup %4223 }
 0xc2e   : > { %v2961_v51 = vsel %vm1862_vm2, %v4224_v50, 0.0 }
 0xc2f   : > { %2962 = vadd.xlane.f32.xlu2 %v2961_v51  ;;  %v3959_v51 = vld [vmem:[%s5149_s7] sm:$0xff] }
 0xc3b   : > { %v2945_v52 = vpop.xlane.xlu0 %2944  ;;  %v2948_v54 = vpop.xlane.xlu2 %2947 }
 0xc3c   : > { %v2951_v55 = vsub.f32 %v2914_v37, %v2945_v52  ;;  %v2952_v56 = vsub.f32 %v2933_v38, %v2948_v54 }
 0xc3d   : > { %v2942_v57 = vpop.xlane.xlu1 %2941 }
 0xc3e   : > { %v2957_v58 = vmul.f32 1.442695, %v2951_v55  ;;  %v2950_v59 = vsub.f32 %v2895_v41, %v2942_v57  ;;  %v2959_v61 = vmul.f32 1.442695, %v2952_v56 }
 0xc40   : > { %4225 = vpow2.f32 %v2957_v58  ;;  %v2955_v60 = vmul.f32 1.442695, %v2950_v59  ;;  %v4196_v59 = vld [vmem:[%s5504_s23] ss:$0 sm:$0xff] }
 0xc42   : > { %4227 = vpow2.f32 %v2955_v60 }
 0xc43   : > { %4229 = vpow2.f32 %v2959_v61 }
 0xc46   : > { %v4226_v53 = vpop.eup %4225 }
 0xc47   : > { %v2967_v62 = vsel %vm1862_vm2, %v4226_v53, 0.0 }
 0xc48   : > { %v4228_v63 = vpop.eup %4227  ;;  %2968 = vadd.xlane.f32.xlu1 %v2967_v62 }
 0xc49   : > { %v2964_v1 = vsel %vm1862_vm2, %v4228_v63, 0.0  ;;  %v4230_v2 = vpop.eup %4229 }
 0xc4a   : > { %2965 = vadd.xlane.f32.xlu2 %v2964_v1  ;;  %v2970_v3 = vsel %vm1862_vm2, %v4230_v2, 0.0 }
 0xc4e   : > { %v2695_v5 = vpop.permute.xlu0 %2694 }
 0xc4f   : > { %2697 = vxpose.xlu0.b32.start.end [1/1] (short) (narrow) %v2695_v5, 32 }
 0xc50   : > { %2971 = vadd.xlane.f32.xlu1 %v2970_v3 }
 0xca2   : > { %v2963_v13 = vpop.xlane.xlu2 %2962 }
 0xca3   : > { %4231 = vrcp.f32 %v2963_v13 }
 0xca9   : > { %v4232_v15 = vpop.eup %4231 }
 0xcaa   : > { %v2977_v19 = vmul.f32 %v4232_v15, %v4224_v50  ;;  %v3960_v50 = vld [vmem:[%s5149_s7 + $0x8] sm:$0xff]  ;;  %s5505_s7 = scalar_lea.vmem [#allocation16], %s5126_s26 }
 0xcac   : > { %v2981_v4 = vpack.c.bf16 %v2977_v19, %v2977_v19 }
 0xcbb   : > { %v2969_v14 = vpop.xlane.xlu1 %2968 }
 0xcbc   : > { %4233 = vrcp.f32 %v2969_v14 }
 0xcbd   : > { %v2966_v8 = vpop.xlane.xlu2 %2965 }
 0xcbe   : > { %4235 = vrcp.f32 %v2966_v8 }
 0xcc2   : > { %v4234_v0 = vpop.eup %4233 }
 0xcc3   : > { %v2979_v20 = vmul.f32 %v4234_v0, %v4226_v53  ;;  %v2972_v27 = vpop.xlane.xlu1 %2971 }
 0xcc4   : > { %4237 = vrcp.f32 %v2972_v27  ;;  %v4236_v28 = vpop.eup %4235  ;;  %v4199_v27 = vld [vmem:[%s5507_s22] ss:$0 sm:$0xff] }
 0xcc5   : > { %v2983_v26 = vpack.c.bf16 %v2979_v20, %v2979_v20  ;;  %v2978_v33 = vmul.f32 %v4236_v28, %v4228_v63  ;;  %v4198_v20 = vld [vmem:[%s5506_s29] ss:$0 sm:$0xff] }
 0xcc7   : > { %v2982_v39 = vpack.c.bf16 %v2978_v33, %v2978_v33  ;;  %v4200_v33 = vld [vmem:[%s5508_s8] ss:$0 sm:$0xff] }
 0xcca   : > { %v4238_v29 = vpop.eup %4237 }
 0xccb   : > { %v2980_v34 = vmul.f32 %v4238_v29, %v4230_v2 }
 0xccd   : > { %v2984_v40 = vpack.c.bf16 %v2980_v34, %v2980_v34 }
 0xcf3   : > { %v2713_v6 = vpop.trf.xlu0 }
 0xcfb   : > { %v2714_v7 = vpop.trf.xlu0 }
 0xd03   : > { %v2715_v9 = vpop.trf.xlu0 }
 0xd04   : > { %v4177_v10 = vpack.i.bf16 %v2715_v9, %v2713_v6  ;;  %v3961_v9 = vld [vmem:[%s5214_s17] sm:$0xff] }
 0xd06   : > { %4178 = vxpose.xlu2.b32.start.end [1/1] (short) (narrow) %v4177_v10, 8  ;;  %v3966_v10 = vld [vmem:[%s5219_s24 + $0x18] sm:$0xff] }
 0xd0b   : > { %v2716_v11 = vpop.trf.xlu0 }
 0xd0c   : > { %v4184_v12 = vpack.i.bf16 %v2716_v11, %v2714_v7  ;;  %v3962_v7 = vld [vmem:[%s5214_s17 + $0x8] sm:$0xff]  ;;  %s5511_s17 = sld [smem:[#allocation36_spill]] }
 0xd0e   : > { %4185 = vxpose.xlu1.b32.start.end [1/1] (short) (narrow) %v4184_v12, 8  ;;  %v3965_v12 = vld [vmem:[%s5219_s24 + $0x10] sm:$0xff] }
 0xd12   : > { %p3944_p4 = scmp.ne.s32.totalorder %s5511_s17, 1 }
 0xd13   : > { %s5512_s14 = sld [smem:[#allocation61_spill]] (!%p3944_p4) }
 0xd9f   : > { %v4179_v16 = vpop.trf.xlu2 }
 0xda0   : > { %v4183_v17 = vunpack.i.h.bf16 %v4179_v16  ;;  %v4180_v18 = vunpack.i.l.bf16 %v4179_v16 }
 0xda2   : > { %v2857_v21 = vpack.c.bf16 %v4180_v18, %v4180_v18  ;;  %v2859_v22 = vpack.c.bf16 %v4183_v17, %v4183_v17  ;;  %v4197_v18 = vld [vmem:[%s5505_s7] ss:$0 sm:$0xff] }
 0xda4   : > { %v2989_v24 = vsel %vm1990_vm3, %v2857_v21, 0  ;;  %v3027_v25 = vsel %vm1990_vm3, %v2859_v22, 0 }
 0xda5   : > { %2998 = vmatpush.bf16.msra.mxu0 %v2989_v24  ;;  %3036 = vmatpush.bf16.msra.mxu2 %v3027_v25 }
 0xda8   : > { %3905 = vmatmul.msk.bf16.vlgmr.msra.gmra.mxu0 %vm1862_vm2, %v2981_v4  ;;  %3907 = vmatmul.msk.bf16.vlgmr.msra.gmra.mxu2 %vm1862_vm2, %v2983_v26  ;;  %v3964_v4 = vld [vmem:[%s5219_s24 + $0x8] sm:$0xff]  ;;  %v3963_v26 = vld [vmem:[%s5219_s24] sm:$0xff] }
 0xda9   : > { %3246 = vmatpush.bf16.msrb.mxu0 %v3960_v50  ;;  %3367 = vmatpush.bf16.msrb.mxu2 %v3966_v10 }
 0xdad   : > { %3247 = vmatpush.bf16.msrb.mxu0 %v3959_v51  ;;  %3368 = vmatpush.bf16.msrb.mxu2 %v3965_v12 }
 0xdb1   : > { %3369 = vmatpush.bf16.msrb.mxu2 %v3964_v4 }
 0xdb2   : > { %v4186_v30 = vpop.trf.xlu1 }
 0xdb3   : > { %v4190_v31 = vunpack.i.h.bf16 %v4186_v30  ;;  %v4187_v32 = vunpack.i.l.bf16 %v4186_v30 }
 0xdb5   : > { %v2858_v35 = vpack.c.bf16 %v4187_v32, %v4187_v32  ;;  %v2860_v36 = vpack.c.bf16 %v4190_v31, %v4190_v31  ;;  %3370 = vmatpush.bf16.msrb.mxu2 %v3963_v26 }
 0xdb7   : > { %v3008_v37 = vsel %vm1990_vm3, %v2858_v35, 0  ;;  %v3046_v38 = vsel %vm1990_vm3, %v2860_v36, 0 }
 0xdb8   : > { %3017 = vmatpush.bf16.msra.mxu1 %v3008_v37  ;;  %3055 = vmatpush.bf16.msra.mxu3 %v3046_v38 }
 0xdbb   : > { %3906 = vmatmul.msk.bf16.vlgmr.msra.gmra.mxu1 %vm1862_vm2, %v2982_v39  ;;  %3908 = vmatmul.msk.bf16.vlgmr.msra.gmra.mxu3 %vm1862_vm2, %v2984_v40 }
 0xdbc   : > { %3314 = vmatpush.bf16.msrb.mxu1 %v3962_v7 }
 0xdc0   : > { %3315 = vmatpush.bf16.msrb.mxu1 %v3961_v9 }
 0xe25   : > { %v3000_v41 = vpop.f32.mrf.mxu0 }
 0xe26   : > { %3061 = vxpose.xlu0.b32.start.end [1/1] (short) (narrow) %v3000_v41, 8 }
 0xe2b   : > { %v3038_v42 = vpop.f32.mrf.mxu2 }
 0xe2d   : > { %v3002_v43 = vpop.f32.mrf.mxu0 }
 0xe33   : > { %v3040_v44 = vpop.f32.mrf.mxu2 }
 0xe38   : > { %v3019_v45 = vpop.f32.mrf.mxu1 }
 0xe39   : > { %3093 = vxpose.xlu2.b32.start.end [1/1] (short) (narrow) %v3019_v45, 8 }
 0xe3e   : > { %v3057_v46 = vpop.f32.mrf.mxu3 }
 0xe40   : > { %v3021_v47 = vpop.f32.mrf.mxu1 }
 0xe41   : > { %3125 = vxpose.xlu2.b32.start.end [1/1] (short) (narrow) %v3038_v42, 8 }
 0xe46   : > { %v3059_v48 = vpop.f32.mrf.mxu3 }
 0xe49   : > { %3157 = vxpose.xlu2.b32.start.end [1/1] (short) (narrow) %v3057_v46, 8 }
 0xeca   : > { %v3077_v52 = vpop.trf.xlu0 }
 0xecb   : > { %3189 = vxpose.xlu1.b32.start [1/4] (short) (narrow) %v3077_v52, 8 }
 0xed2   : > { %v3109_v54 = vpop.trf.xlu2 }
 0xed3   : > { %3190 = vxpose.xlu1.b32.cont [2/4] (short) (narrow) %v3109_v54, 8 }
 0xeda   : > { %v3141_v55 = vpop.trf.xlu2 }
 0xedb   : > { %3191 = vxpose.xlu1.b32.cont [3/4] (short) (narrow) %v3141_v55, 8  ;;  %v4201_v55 = vld [vmem:[%s5509_s27] ss:$0 sm:$0xff] }
 0xee2   : > { %v3173_v56 = vpop.trf.xlu2 }
 0xee3   : > { %3192 = vxpose.xlu1.b32.end [4/4] (short) (narrow) %v3173_v56, 8 }
 0xf6f   : > { %v3205_v57 = vpop.trf.xlu1 }
 0xf70   : > { %v3221_v58 = vpack.c.bf16 %v3205_v57, %v3205_v57  ;;  %v4202_v57 = vld [vmem:[%s5510_s21] ss:$0 sm:$0xff] }
 0xf72   : > { %3917 = vmatmul.msk.bf16.vlgmr.msrb.gmra.mxu0 %vm1346_vm1, %v3221_v58 }
 0xfef   : > { %v3249_v60 = vpop.f32.mrf.mxu0 }
 0xff0   : > { %v3250_v61 = vadd.f32 %v4196_v59, %v3249_v60 }
 0xff2   : > { %v3253_v53 = vadd.f32 %v3250_v61, %v5295_v49 }
 0xff4   : > { %v3254_v62 = vsel %vm1346_vm1, %v3253_v53, 0.0 }
 0xff5   : > { %3255 = vadd.xlane.f32.xlu0 %v3254_v62 }
 0xff7   : > { %v3251_v63 = vpop.f32.mrf.mxu0 }
0x1068   : > { %v3256_v1 = vpop.xlane.xlu0 %3255 }
0x1069   : > { %v3257_v2 = vmul.f32 %v3256_v1, %v5274_v23 }
0x106b   : > { %v3258_v3 = vsub.f32 %v3253_v53, %v3257_v2 }
0x106d   : > { %v3259_v5 = vmul.f32 %v3258_v3, %v3258_v3 }
0x106f   : > { %v3260_v6 = vsel %vm1346_vm1, %v3259_v5, 0.0 }
0x1070   : > { %3261 = vadd.xlane.f32.xlu2 %v3260_v6 }
0x10e3   : > { %v3262_v49 = vpop.xlane.xlu2 %3261 }
0x10e4   : > { %v3263_v11 = vmul.f32 %v3262_v49, %v5274_v23 }
0x10e6   : > { %v3264_v13 = vadd.f32 1e-05, %v3263_v11 }
0x10e8   : > { %4239 = vrsqrt.f32 %v3264_v13  ;;  %vm3271_vm9 = vweird.f32 %v3264_v13 }
0x10ee   : > { %v4240_v14 = vpop.eup %4239 }
0x10ef   : > { %v3266_v8 = vmul.f32 %v4240_v14, %v3264_v13  ;;  %vm3272_vm8 = vweird.f32 %v4240_v14 }
0x10f0   : > { %vm3273_vm10 = vmor %vm3271_vm9, %vm3272_vm8 }
0x10f1   : > { %v3267_v15 = vmul.f32 %v4240_v14, %v3266_v8 }
0x10f3   : > { %v3268_v0 = vmul.f32 0.5, %v3267_v15 }
0x10f5   : > { %v3269_v16 = vsub.f32 1.5, %v3268_v0 }
0x10f7   : > { %v3270_v17 = vmul.f32 %v4240_v14, %v3269_v16 }
0x10f9   : > { %v3274_v19 = vsel %vm3273_vm10, %v4240_v14, %v3270_v17 }
0x10fa   : > { %v3275_v21 = vmul.f32 %v3274_v19, %v3258_v3 }
0x10fc   : > { %v3279_v22 = vmul.f32 %v4197_v18, %v3275_v21 }
0x10fe   : > { %v3283_v24 = vadd.f32 %v4198_v20, %v3279_v22 }
0x1100   : > { %v3284_v25 = vpack.c.bf16 %v3283_v24, %v3283_v24 }
0x1102   : > { %3926 = vmatmul.msk.bf16.vlgmr.msrb.gmra.mxu1 %vm1346_vm1, %v3284_v25 }
0x117f   : > { %v3317_v28 = vpop.f32.mrf.mxu1 }
0x1180   : > { %v3318_v29 = vadd.f32 %v4199_v27, %v3317_v28 }
0x1182   : > { %v3321_v30 = vmax.f32 %v3318_v29, 0.0 }
0x1184   : > { %v3322_v31 = vpack.c.bf16 %v3321_v30, %v3321_v30 }
0x1186   : > { %3943 = vmatmul.msk.bf16.vlgmr.msrb.gmra.mxu2 %vm3359_vm11, %v3322_v31 }
0x1187   : > { %v3319_v32 = vpop.f32.mrf.mxu1 }
0x1209   : > { %v3372_v34 = vpop.f32.mrf.mxu2 }
0x120a   : > { %v3373_v35 = vadd.f32 %v4200_v33, %v3372_v34 }
0x120c   : > { %v3378_v36 = vadd.f32 %v3373_v35, %v3283_v24 }
0x120e   : > { %v3379_v37 = vsel %vm1346_vm1, %v3378_v36, 0.0 }
0x120f   : > { %3380 = vadd.xlane.f32.xlu1 %v3379_v37 }
0x1211   : > { %v3374_v38 = vpop.f32.mrf.mxu2 }
0x1282   : > { %v3381_v39 = vpop.xlane.xlu1 %3380 }
0x1283   : > { %v3382_v40 = vmul.f32 %v3381_v39, %v5274_v23 }
0x1285   : > { %v3383_v41 = vsub.f32 %v3378_v36, %v3382_v40 }
0x1287   : > { %v3384_v42 = vmul.f32 %v3383_v41, %v3383_v41 }
0x1289   : > { %v3385_v43 = vsel %vm1346_vm1, %v3384_v42, 0.0 }
0x128a   : > { %3386 = vadd.xlane.f32.xlu0 %v3385_v43 }
0x12fd   : > { %v3387_v44 = vpop.xlane.xlu0 %3386 }
0x12fe   : > { %v3388_v45 = vmul.f32 %v3387_v44, %v5274_v23 }
0x1300   : > { %v3389_v46 = vadd.f32 1e-05, %v3388_v45 }
0x1302   : > { %4241 = vrsqrt.f32 %v3389_v46  ;;  %vm3396_vm13 = vweird.f32 %v3389_v46 }
0x1308   : > { %v4242_v47 = vpop.eup %4241 }
0x1309   : > { %v3391_v48 = vmul.f32 %v4242_v47, %v3389_v46  ;;  %vm3397_vm12 = vweird.f32 %v4242_v47 }
0x130a   : > { %vm3398_vm14 = vmor %vm3396_vm13, %vm3397_vm12 }
0x130b   : > { %v3392_v50 = vmul.f32 %v4242_v47, %v3391_v48 }
0x130d   : > { %v3393_v51 = vmul.f32 0.5, %v3392_v50 }
0x130f   : > { %v3394_v52 = vsub.f32 1.5, %v3393_v51 }
0x1311   : > { %v3395_v54 = vmul.f32 %v4242_v47, %v3394_v52 }
0x1313   : > { %v3399_v56 = vsel %vm3398_vm14, %v4242_v47, %v3395_v54 }
0x1314   : > { %v3400_v58 = vmul.f32 %v3399_v56, %v3383_v41 }
0x1316   : > { %v3404_v59 = vmul.f32 %v4201_v55, %v3400_v58  ;;  %3413 = sbr.rel (%p3944_p4) target bundleno = 5160 (0x1428), region = 180 }
0x1318   : > { %v3408_v60 = vadd.f32 %v4202_v57, %v3404_v59 }
0x131a   : > { %3409 = vst.msk [vmem:[#allocation2] sm:$0xff] %vm1346_vm1, %v3408_v60 }
0x131b   : > { %v3414_v61 = vsel %vm1346_vm1, %v3408_v60, 0.0  ;;  %v4243_v13 = vld [vmem:[%s5512_s14] ss:$0 sm:$0xff]  ;;  %v4244_v8 = vld [vmem:[#allocation25] ss:$0 sm:$0xff] }
0x131c   : > { %3415 = vadd.xlane.f32.xlu0 %v3414_v61 }
0x138f   : > { %v3416_v53 = vpop.xlane.xlu0 %3415 }
0x1390   : > { %v3417_v62 = vmul.f32 %v3416_v53, %v5274_v23 }
0x1392   : > { %v3418_v63 = vsub.f32 %v3408_v60, %v3417_v62 }
0x1394   : > { %v3419_v1 = vmul.f32 %v3418_v63, %v3418_v63 }
0x1396   : > { %v3420_v2 = vsel %vm1346_vm1, %v3419_v1, 0.0 }
0x1397   : > { %3421 = vadd.xlane.f32.xlu0 %v3420_v2 }
0x140a   : > { %v3422_v3 = vpop.xlane.xlu0 %3421 }
0x140b   : > { %v3423_v5 = vmul.f32 %v3422_v3, %v5274_v23 }
0x140d   : > { %v3424_v6 = vadd.f32 1e-05, %v3423_v5 }
0x140f   : > { %4245 = vrsqrt.f32 %v3424_v6  ;;  %vm3431_vm0 = vweird.f32 %v3424_v6 }
0x1415   : > { %v4246_v7 = vpop.eup %4245 }
0x1416   : > { %v3426_v9 = vmul.f32 %v4246_v7, %v3424_v6  ;;  %vm3432_vm15 = vweird.f32 %v4246_v7 }
0x1417   : > { %vm3433_vm2 = vmor %vm3431_vm0, %vm3432_vm15 }
0x1418   : > { %v3427_v10 = vmul.f32 %v4246_v7, %v3426_v9 }
0x141a   : > { %v3428_v49 = vmul.f32 0.5, %v3427_v10 }
0x141c   : > { %v3429_v11 = vsub.f32 1.5, %v3428_v49 }
0x141e   : > { %v3430_v12 = vmul.f32 %v4246_v7, %v3429_v11 }
0x1420   : > { %v3434_v14 = vsel %vm3433_vm2, %v4246_v7, %v3430_v12 }
0x1421   : > { %v3435_v15 = vmul.f32 %v3434_v14, %v3418_v63 }
0x1423   : > { %v3440_v23 = vmul.f32 %v4243_v13, %v3435_v15 }
0x1425   : > { %v3445_v0 = vadd.f32 %v4244_v8, %v3440_v23 }
0x1427   : > { %3446 = vst.msk [vmem:[%s1307_s3] sm:$0xff] %vm1346_vm1, %v3445_v0 }
0x1428 PF: > { %s55_s2 = sadd.s32 1, %s4769_s2   ;;  %s5514_s18 = sld [smem:[#allocation35_spill]] }
0x1429   : > { %p52_p5 = scmp.ge.s32.totalorder %s55_s2, 6   ;;  %s5515_s24 = sld [smem:[#allocation41_spill]] }
0x142a   : > { %s5516_s5 = sld [smem:[#allocation38_spill]]  ;;  %s5519_s4 = smov %s4745_s30 }
0x142b   : > { %s5517_s10 = sld [smem:[#allocation39_spill]]  ;;  %s5521_s25 = smov %s4761_s1 }
0x142c   : > { %s5518_s26 = sld [smem:[#allocation40_spill]] }
0x142d   :  { %54 = sbr.rel (!%p52_p5) target bundleno = 41 (0x29), region = 334 }
0x142e   : > { %s5520_s30 = smov %s5514_s18 }
0x1431   : > { %s5522_s1 = smov %s5517_s10 }
0x1432   :  { %3466 = vsyncpa [#allocation4], 1 }
0x1433   :  { %3468 = vsyncpa [#allocation4 + $0x1], 1 }
0x1434   :  { %3469 = vsyncpa [#allocation6], 1 }
0x1435   :  { %3471 = vsyncpa [#allocation6 + $0x1], 1 }
0x1436   :  { %3472 = vsyncpa [#allocation9], 1 }
0x1437   :  { %3474 = vsyncpa [#allocation9 + $0x1], 1 }
0x1438   :  { %3475 = vsyncpa [#allocation12], 1 }
0x1439   :  { %3477 = vsyncpa [#allocation12 + $0x1], 1 }
0x143a   :  { %3478 = vsyncpa [#allocation15], 1 }
0x143b   :  { %3480 = vsyncpa [#allocation15 + $0x1], 1 }
0x143c   :  { %3481 = vsyncpa [#allocation18], 1 }
0x143d   :  { %3483 = vsyncpa [#allocation18 + $0x1], 1 }
0x143e   :  { %3484 = vsyncpa [#allocation21], 1 }
0x143f   :  { %3486 = vsyncpa [#allocation21 + $0x1], 1 }
0x1440   :  { %3487 = vsyncpa [#allocation24], 1 }
0x1441   :  { %3489 = vsyncpa [#allocation24 + $0x1], 1 }

</bundles_post_ra>
